<compile_context>
chip_gen: v6e
topology: v6e:2x2x1
jax: 0.10.0
libtpu: 0.0.40
codegen_flags: <defaults>
</compile_context>

<pallas_src>
import functools
import math

import jax
import jax.numpy as jnp
from jax.experimental import pallas as pl
from jax.experimental.pallas import tpu as pltpu

_LANE = 128
_BIG = 1e30                      # finite "ignore" sentinel for padded feature rows
_VMEM_BUDGET = 12 * 1024 * 1024  # below default scoped VMEM on v5e (16 MiB) and v6e/v7x (32 MiB)


def _round_up(a: int, m: int) -> int:
    return (a + m - 1) // m * m


def _accumulate_block(x_ref, w_ref, o_ref, op, init, *, sub_b, nk, k):
    """Register-tiled (min|max)-plus accumulation for one (b_t, n_t) block.

    x_ref: (b_t, f_t)  input features (batch-major), native float dtype
    w_ref: (f_t, n_t)  fused signed weights for this column block / f-chunk (f32)
    o_ref: (b_t, n_t)  f32 output block; also the accumulator across the f-chunk
                       grid axis (its index_map ignores k, so it stays resident).
    """
    b_t, n_t = o_ref.shape
    f_t = x_ref.shape[1]
    n_sub = n_t // _LANE

    @pl.loop(0, b_t // sub_b)
    def _(r):
        r0 = pl.multiple_of(r * sub_b, sub_b)
        rows = pl.ds(r0, sub_b)

        # vreg-resident accumulators, one per 128-lane subtile.
        if nk == 1:
            accs = [jnp.full((sub_b, _LANE), init, jnp.float32) for _ in range(n_sub)]
        else:
            accs = [jnp.where(k == 0,
                              jnp.full((sub_b, _LANE), init, jnp.float32),
                              o_ref[rows, c * _LANE:(c + 1) * _LANE])
                    for c in range(n_sub)]

        # Running (min|max)-plus over this feature chunk: one lane broadcast of
        # the x column per feature (shared by both lane subtiles), then pure
        # VALU add + min/max on register-resident accumulators.
        for f in range(f_t):
            xb = jnp.broadcast_to(
                x_ref[rows, f:f + 1].astype(jnp.float32), (sub_b, _LANE))
            for c in range(n_sub):
                w_row = w_ref[f:f + 1, c * _LANE:(c + 1) * _LANE]      # (1, 128)
                accs[c] = op(accs[c], xb + w_row)

        # One lane-dense store per subtile per chunk.
        for c in range(n_sub):
            o_ref[rows, c * _LANE:(c + 1) * _LANE] = accs[c]


def _dilate_erode_kernel(x_ref, w_ref, o_ref, *, ne_blocks, nd_blocks, nk, sub_b):
    j = pl.program_id(1)          # output column block (erosion blocks first)
    k = pl.program_id(2)          # feature chunk

    run = functools.partial(_accumulate_block, x_ref, w_ref, o_ref,
                            sub_b=sub_b, nk=nk, k=k)

    if nd_blocks == 0:            # erosion-only layer
        run(jnp.minimum, _BIG)
    elif ne_blocks == 0:          # dilation-only layer
        run(jnp.maximum, -_BIG)
    else:
        @pl.when(j < ne_blocks)   # erosion blocks: min_f(x + (-E))
        def _():
            run(jnp.minimum, _BIG)

        @pl.when(j >= ne_blocks)  # dilation blocks: max_f(x + D)
        def _():
            run(jnp.maximum, -_BIG)


@functools.partial(jax.jit, static_argnames=("in_features",))
def dilate_erode(x, dilations, erosions, *, in_features):
    """x: (B, in_features); dilations: (F+1, ND) or empty; erosions: (F+1, NE) or empty."""
    B = x.shape[0]
    F = in_features
    x = x.reshape(B, F)
    if not jnp.issubdtype(x.dtype, jnp.floating):
        x = x.astype(jnp.float32)
    elif x.dtype == jnp.dtype(jnp.float64):
        x = x.astype(jnp.float32)

    ND = dilations.shape[-1] if (dilations.ndim == 2 and dilations.shape[-1] > 0) else 0
    NE = erosions.shape[-1] if (erosions.ndim == 2 and erosions.shape[-1] > 0) else 0
    if ND == 0 and NE == 0:
        return jnp.zeros((B, 0), jnp.float32)

    # ---- feature-axis chunking (innermost grid axis; bounds trace size) ----
    F_aug = F + 1                                   # appended zero "bias" feature
    if F_aug <= 512:
        f_t = _round_up(F_aug, 8)
        F_pad, nk = f_t, 1
    else:
        f_t = 512                                   # multiple of 128 (lane-dim block rule)
        F_pad = _round_up(F_aug, f_t)
        nk = F_pad // f_t

    # ---- fused signed weight; each column block is purely erosion or dilation ----
    n_t = 2 * _LANE                                 # 2 lane subtiles share each x broadcast
    NE_pad = _round_up(NE, n_t) if NE else 0
    ND_pad = _round_up(ND, n_t) if ND else 0
    ne_blocks, nd_blocks = NE_pad // n_t, ND_pad // n_t
    parts = []
    if NE:
        e = jnp.pad(-erosions.astype(jnp.float32), ((0, 0), (NE_pad - NE, 0)))      # left lane pad
        e = jnp.pad(e, ((0, F_pad - F_aug), (0, 0)), constant_values=_BIG)           # ignored by min
        parts.append(e)
    if ND:
        d = jnp.pad(dilations.astype(jnp.float32), ((0, 0), (0, ND_pad - ND)))       # right lane pad
        d = jnp.pad(d, ((0, F_pad - F_aug), (0, 0)), constant_values=-_BIG)          # ignored by max
        parts.append(d)
    w = parts[0] if len(parts) == 1 else jnp.concatenate(parts, axis=1)               # (F_pad, N_pad)
    N_pad = NE_pad + ND_pad

    # ---- batch tiling: >=2 parallel row blocks when B allows (v7x megacore) ----
    row_align = 64 if B >= 64 else 8
    x_bytes = jnp.dtype(x.dtype).itemsize
    w_block_bytes = 4 * f_t * n_t
    per_row_bytes = 2 * (x_bytes * f_t + 4 * n_t)            # double-buffered x row + out row
    avail = max(0, _VMEM_BUDGET - 2 * w_block_bytes)
    b_cap = max(row_align, (avail // per_row_bytes) // row_align * row_align)
    half_b = _round_up(max(1, -(-B // 2)), row_align)
    b_t = max(row_align, min(512, half_b, b_cap))
    B_pad = _round_up(B, b_t)
    sub_b = math.gcd(b_t, 64)                                # register-tile height

    # Zero padding supplies both the bias feature column and any chunk padding.
    x_p = jnp.pad(x, ((0, B_pad - B), (0, F_pad - F)))

    grid = (B_pad // b_t, N_pad // n_t, nk)
    out = pl.pallas_call(
        functools.partial(_dilate_erode_kernel, ne_blocks=ne_blocks,
                          nd_blocks=nd_blocks, nk=nk, sub_b=sub_b),
        out_shape=jax.ShapeDtypeStruct((B_pad, N_pad), jnp.float32),
        grid=grid,
        in_specs=[pl.BlockSpec((b_t, f_t), lambda i, j, k: (i, k)),
                  pl.BlockSpec((f_t, n_t), lambda i, j, k: (k, j))],
        out_specs=pl.BlockSpec((b_t, n_t), lambda i, j, k: (i, j)),
        compiler_params=pltpu.CompilerParams(
            dimension_semantics=("parallel", "parallel", "arbitrary")),
        cost_estimate=pl.CostEstimate(
            flops=2 * B_pad * F_pad * N_pad,
            transcendentals=0,
            bytes_accessed=x_bytes * B_pad * F_pad + 4 * F_pad * N_pad + 4 * B_pad * N_pad),
    )(x_p, w)

    # Left-padded erosion region makes [eroded | dilated] a contiguous slice.
    pad_e = NE_pad - NE
    return out[:B, pad_e:pad_e + NE + ND]


def _xavier_uniform(key, fan_in, fan_out):
    bound = math.sqrt(6.0 / (fan_in + fan_out))
    return jax.random.uniform(key, (fan_in, fan_out), jnp.float32,
                              minval=-bound, maxval=bound)


def _reference(x, dilations, erosions):
    B = x.shape[0]
    x_aug = jnp.concatenate([x.astype(jnp.float32), jnp.zeros((B, 1), jnp.float32)], axis=1)
    ref_ero = jnp.min(x_aug[:, :, None] - erosions[None], axis=1)
    ref_dil = jnp.max(x_aug[:, :, None] + dilations[None], axis=1)
    return jnp.concatenate([ref_ero, ref_dil], axis=1)


if __name__ == "__main__":
    # ---- primary demo (matches the PyTorch module at small shapes) ----
    B, F, ND, NE = 2, 16, 8, 8
    key = jax.random.PRNGKey(0)
    kx, kd, ke = jax.random.split(key, 3)
    x = jax.random.normal(kx, (B, F), jnp.float32)
    dilations = _xavier_uniform(kd, F + 1, ND)
    erosions = _xavier_uniform(ke, F + 1, NE)

    out = jax.block_until_ready(dilate_erode(x, dilations, erosions, in_features=F))
    ref = _reference(x, dilations, erosions)
    assert out.shape == (B, NE + ND), out.shape
    assert jnp.allclose(out, ref, atol=1e-5), (out, ref)

    # ---- secondary check: multi-row-block / padded / both-branch path ----
    B2, F2, ND2, NE2 = 137, 40, 33, 20
    k2x, k2d, k2e = jax.random.split(jax.random.PRNGKey(0), 3)
    x2 = jax.random.normal(k2x, (B2, F2), jnp.float32)
    d2 = _xavier_uniform(k2d, F2 + 1, ND2)
    e2 = _xavier_uniform(k2e, F2 + 1, NE2)
    out2 = jax.block_until_ready(dilate_erode(x2, d2, e2, in_features=F2))
    ref2 = _reference(x2, d2, e2)
    assert out2.shape == (B2, NE2 + ND2), out2.shape
    assert jnp.allclose(out2, ref2, atol=1e-5)

    print("KERNEL_OK")
</pallas_src>

<mosaic_0001>
module attributes {stable_mosaic.version = 11 : i64} {
  func.func @_dilate_erode_kernel(%arg0: i32, %arg1: i32, %arg2: i32, %arg3: memref<8x24xf32, #tpu.memory_space<vmem>>, %arg4: memref<24x256xf32, #tpu.memory_space<vmem>>, %arg5: memref<8x256xf32, #tpu.memory_space<vmem>>) attributes {dimension_semantics = [#tpu.dimension_semantics<parallel>, #tpu.dimension_semantics<parallel>, #tpu.dimension_semantics<arbitrary>], iteration_bounds = array<i64: 1, 2, 1>, scalar_prefetch = 0 : i64, scratch_operands = 0 : i64, tpu.core_type = #tpu.core_type<tc>, window_params = [{transform_indices = @transform_0, window_bounds = array<i64: 8, 24>}, {transform_indices = @transform_1, window_bounds = array<i64: 24, 256>}, {transform_indices = @transform_2, window_bounds = array<i64: 8, 256>}]} {
    %c1_i32 = arith.constant 1 : i32
    %0 = arith.cmpi slt, %arg1, %c1_i32 : i32
    %1 = arith.extui %0 : i1 to i32
    %c0_i32 = arith.constant 0 : i32
    %2 = arith.cmpi ne, %1, %c0_i32 : i32
    scf.if %2 {
      %c0_i32_2 = arith.constant 0 : i32
      %c1_i32_3 = arith.constant 1 : i32
      %6 = arith.muli %c0_i32_2, %c1_i32_3 : i32
      %c0_i32_4 = arith.constant 0 : i32
      %7 = arith.addi %c0_i32_4, %6 : i32
      %c8_i32 = arith.constant 8 : i32
      %8 = arith.muli %7, %c8_i32 : i32
      %9 = tpu.assume_multiple %8, 8 : i32
      %cst = arith.constant 1.000000e+30 : f32
      %10 = vector.broadcast %cst : f32 to vector<8x128xf32>
      %cst_5 = arith.constant 1.000000e+30 : f32
      %11 = vector.broadcast %cst_5 : f32 to vector<8x128xf32>
      %12 = arith.index_cast %9 : i32 to index
      %c0 = arith.constant 0 : index
      %13 = vector.load %arg3[%12, %c0] : memref<8x24xf32, #tpu.memory_space<vmem>>, vector<8x1xf32>
      %14 = vector.shape_cast %13 : vector<8x1xf32> to vector<8x1xf32>
      %15 = vector.broadcast %14 : vector<8x1xf32> to vector<8x128xf32>
      %c0_6 = arith.constant 0 : index
      %c0_7 = arith.constant 0 : index
      %16 = vector.load %arg4[%c0_6, %c0_7] : memref<24x256xf32, #tpu.memory_space<vmem>>, vector<1x128xf32>
      %17 = vector.broadcast %16 : vector<1x128xf32> to vector<8x128xf32>
      %18 = arith.addf %15, %17 : vector<8x128xf32>
      %19 = arith.minimumf %10, %18 : vector<8x128xf32>
      %c0_8 = arith.constant 0 : index
      %c128 = arith.constant 128 : index
      %20 = vector.load %arg4[%c0_8, %c128] : memref<24x256xf32, #tpu.memory_space<vmem>>, vector<1x128xf32>
      %21 = vector.broadcast %20 : vector<1x128xf32> to vector<8x128xf32>
      %22 = arith.addf %15, %21 : vector<8x128xf32>
      %23 = arith.minimumf %11, %22 : vector<8x128xf32>
      %24 = arith.index_cast %9 : i32 to index
      %c1 = arith.constant 1 : index
      %25 = vector.load %arg3[%24, %c1] : memref<8x24xf32, #tpu.memory_space<vmem>>, vector<8x1xf32>
      %26 = vector.shape_cast %25 : vector<8x1xf32> to vector<8x1xf32>
      %27 = vector.broadcast %26 : vector<8x1xf32> to vector<8x128xf32>
      %c1_9 = arith.constant 1 : index
      %c0_10 = arith.constant 0 : index
      %28 = vector.load %arg4[%c1_9, %c0_10] : memref<24x256xf32, #tpu.memory_space<vmem>>, vector<1x128xf32>
      %29 = vector.broadcast %28 : vector<1x128xf32> to vector<8x128xf32>
      %30 = arith.addf %27, %29 : vector<8x128xf32>
      %31 = arith.minimumf %19, %30 : vector<8x128xf32>
      %c1_11 = arith.constant 1 : index
      %c128_12 = arith.constant 128 : index
      %32 = vector.load %arg4[%c1_11, %c128_12] : memref<24x256xf32, #tpu.memory_space<vmem>>, vector<1x128xf32>
      %33 = vector.broadcast %32 : vector<1x128xf32> to vector<8x128xf32>
      %34 = arith.addf %27, %33 : vector<8x128xf32>
      %35 = arith.minimumf %23, %34 : vector<8x128xf32>
      %36 = arith.index_cast %9 : i32 to index
      %c2 = arith.constant 2 : index
      %37 = vector.load %arg3[%36, %c2] : memref<8x24xf32, #tpu.memory_space<vmem>>, vector<8x1xf32>
      %38 = vector.shape_cast %37 : vector<8x1xf32> to vector<8x1xf32>
      %39 = vector.broadcast %38 : vector<8x1xf32> to vector<8x128xf32>
      %c2_13 = arith.constant 2 : index
      %c0_14 = arith.constant 0 : index
      %40 = vector.load %arg4[%c2_13, %c0_14] : memref<24x256xf32, #tpu.memory_space<vmem>>, vector<1x128xf32>
      %41 = vector.broadcast %40 : vector<1x128xf32> to vector<8x128xf32>
      %42 = arith.addf %39, %41 : vector<8x128xf32>
      %43 = arith.minimumf %31, %42 : vector<8x128xf32>
      %c2_15 = arith.constant 2 : index
      %c128_16 = arith.constant 128 : index
      %44 = vector.load %arg4[%c2_15, %c128_16] : memref<24x256xf32, #tpu.memory_space<vmem>>, vector<1x128xf32>
      %45 = vector.broadcast %44 : vector<1x128xf32> to vector<8x128xf32>
      %46 = arith.addf %39, %45 : vector<8x128xf32>
      %47 = arith.minimumf %35, %46 : vector<8x128xf32>
      %48 = arith.index_cast %9 : i32 to index
      %c3 = arith.constant 3 : index
      %49 = vector.load %arg3[%48, %c3] : memref<8x24xf32, #tpu.memory_space<vmem>>, vector<8x1xf32>
      %50 = vector.shape_cast %49 : vector<8x1xf32> to vector<8x1xf32>
      %51 = vector.broadcast %50 : vector<8x1xf32> to vector<8x128xf32>
      %c3_17 = arith.constant 3 : index
      %c0_18 = arith.constant 0 : index
      %52 = vector.load %arg4[%c3_17, %c0_18] : memref<24x256xf32, #tpu.memory_space<vmem>>, vector<1x128xf32>
      %53 = vector.broadcast %52 : vector<1x128xf32> to vector<8x128xf32>
      %54 = arith.addf %51, %53 : vector<8x128xf32>
      %55 = arith.minimumf %43, %54 : vector<8x128xf32>
      %c3_19 = arith.constant 3 : index
      %c128_20 = arith.constant 128 : index
      %56 = vector.load %arg4[%c3_19, %c128_20] : memref<24x256xf32, #tpu.memory_space<vmem>>, vector<1x128xf32>
      %57 = vector.broadcast %56 : vector<1x128xf32> to vector<8x128xf32>
      %58 = arith.addf %51, %57 : vector<8x128xf32>
      %59 = arith.minimumf %47, %58 : vector<8x128xf32>
      %60 = arith.index_cast %9 : i32 to index
      %c4 = arith.constant 4 : index
      %61 = vector.load %arg3[%60, %c4] : memref<8x24xf32, #tpu.memory_space<vmem>>, vector<8x1xf32>
      %62 = vector.shape_cast %61 : vector<8x1xf32> to vector<8x1xf32>
      %63 = vector.broadcast %62 : vector<8x1xf32> to vector<8x128xf32>
      %c4_21 = arith.constant 4 : index
      %c0_22 = arith.constant 0 : index
      %64 = vector.load %arg4[%c4_21, %c0_22] : memref<24x256xf32, #tpu.memory_space<vmem>>, vector<1x128xf32>
      %65 = vector.broadcast %64 : vector<1x128xf32> to vector<8x128xf32>
      %66 = arith.addf %63, %65 : vector<8x128xf32>
      %67 = arith.minimumf %55, %66 : vector<8x128xf32>
      %c4_23 = arith.constant 4 : index
      %c128_24 = arith.constant 128 : index
      %68 = vector.load %arg4[%c4_23, %c128_24] : memref<24x256xf32, #tpu.memory_space<vmem>>, vector<1x128xf32>
      %69 = vector.broadcast %68 : vector<1x128xf32> to vector<8x128xf32>
      %70 = arith.addf %63, %69 : vector<8x128xf32>
      %71 = arith.minimumf %59, %70 : vector<8x128xf32>
      %72 = arith.index_cast %9 : i32 to index
      %c5 = arith.constant 5 : index
      %73 = vector.load %arg3[%72, %c5] : memref<8x24xf32, #tpu.memory_space<vmem>>, vector<8x1xf32>
      %74 = vector.shape_cast %73 : vector<8x1xf32> to vector<8x1xf32>
      %75 = vector.broadcast %74 : vector<8x1xf32> to vector<8x128xf32>
      %c5_25 = arith.constant 5 : index
      %c0_26 = arith.constant 0 : index
      %76 = vector.load %arg4[%c5_25, %c0_26] : memref<24x256xf32, #tpu.memory_space<vmem>>, vector<1x128xf32>
      %77 = vector.broadcast %76 : vector<1x128xf32> to vector<8x128xf32>
      %78 = arith.addf %75, %77 : vector<8x128xf32>
      %79 = arith.minimumf %67, %78 : vector<8x128xf32>
      %c5_27 = arith.constant 5 : index
      %c128_28 = arith.constant 128 : index
      %80 = vector.load %arg4[%c5_27, %c128_28] : memref<24x256xf32, #tpu.memory_space<vmem>>, vector<1x128xf32>
      %81 = vector.broadcast %80 : vector<1x128xf32> to vector<8x128xf32>
      %82 = arith.addf %75, %81 : vector<8x128xf32>
      %83 = arith.minimumf %71, %82 : vector<8x128xf32>
      %84 = arith.index_cast %9 : i32 to index
      %c6 = arith.constant 6 : index
      %85 = vector.load %arg3[%84, %c6] : memref<8x24xf32, #tpu.memory_space<vmem>>, vector<8x1xf32>
      %86 = vector.shape_cast %85 : vector<8x1xf32> to vector<8x1xf32>
      %87 = vector.broadcast %86 : vector<8x1xf32> to vector<8x128xf32>
      %c6_29 = arith.constant 6 : index
      %c0_30 = arith.constant 0 : index
      %88 = vector.load %arg4[%c6_29, %c0_30] : memref<24x256xf32, #tpu.memory_space<vmem>>, vector<1x128xf32>
      %89 = vector.broadcast %88 : vector<1x128xf32> to vector<8x128xf32>
      %90 = arith.addf %87, %89 : vector<8x128xf32>
      %91 = arith.minimumf %79, %90 : vector<8x128xf32>
      %c6_31 = arith.constant 6 : index
      %c128_32 = arith.constant 128 : index
      %92 = vector.load %arg4[%c6_31, %c128_32] : memref<24x256xf32, #tpu.memory_space<vmem>>, vector<1x128xf32>
      %93 = vector.broadcast %92 : vector<1x128xf32> to vector<8x128xf32>
      %94 = arith.addf %87, %93 : vector<8x128xf32>
      %95 = arith.minimumf %83, %94 : vector<8x128xf32>
      %96 = arith.index_cast %9 : i32 to index
      %c7 = arith.constant 7 : index
      %97 = vector.load %arg3[%96, %c7] : memref<8x24xf32, #tpu.memory_space<vmem>>, vector<8x1xf32>
      %98 = vector.shape_cast %97 : vector<8x1xf32> to vector<8x1xf32>
      %99 = vector.broadcast %98 : vector<8x1xf32> to vector<8x128xf32>
      %c7_33 = arith.constant 7 : index
      %c0_34 = arith.constant 0 : index
      %100 = vector.load %arg4[%c7_33, %c0_34] : memref<24x256xf32, #tpu.memory_space<vmem>>, vector<1x128xf32>
      %101 = vector.broadcast %100 : vector<1x128xf32> to vector<8x128xf32>
      %102 = arith.addf %99, %101 : vector<8x128xf32>
      %103 = arith.minimumf %91, %102 : vector<8x128xf32>
      %c7_35 = arith.constant 7 : index
      %c128_36 = arith.constant 128 : index
      %104 = vector.load %arg4[%c7_35, %c128_36] : memref<24x256xf32, #tpu.memory_space<vmem>>, vector<1x128xf32>
      %105 = vector.broadcast %104 : vector<1x128xf32> to vector<8x128xf32>
      %106 = arith.addf %99, %105 : vector<8x128xf32>
      %107 = arith.minimumf %95, %106 : vector<8x128xf32>
      %108 = arith.index_cast %9 : i32 to index
      %c8 = arith.constant 8 : index
      %109 = vector.load %arg3[%108, %c8] : memref<8x24xf32, #tpu.memory_space<vmem>>, vector<8x1xf32>
      %110 = vector.shape_cast %109 : vector<8x1xf32> to vector<8x1xf32>
      %111 = vector.broadcast %110 : vector<8x1xf32> to vector<8x128xf32>
      %c8_37 = arith.constant 8 : index
      %c0_38 = arith.constant 0 : index
      %112 = vector.load %arg4[%c8_37, %c0_38] : memref<24x256xf32, #tpu.memory_space<vmem>>, vector<1x128xf32>
      %113 = vector.broadcast %112 : vector<1x128xf32> to vector<8x128xf32>
      %114 = arith.addf %111, %113 : vector<8x128xf32>
      %115 = arith.minimumf %103, %114 : vector<8x128xf32>
      %c8_39 = arith.constant 8 : index
      %c128_40 = arith.constant 128 : index
      %116 = vector.load %arg4[%c8_39, %c128_40] : memref<24x256xf32, #tpu.memory_space<vmem>>, vector<1x128xf32>
      %117 = vector.broadcast %116 : vector<1x128xf32> to vector<8x128xf32>
      %118 = arith.addf %111, %117 : vector<8x128xf32>
      %119 = arith.minimumf %107, %118 : vector<8x128xf32>
      %120 = arith.index_cast %9 : i32 to index
      %c9 = arith.constant 9 : index
      %121 = vector.load %arg3[%120, %c9] : memref<8x24xf32, #tpu.memory_space<vmem>>, vector<8x1xf32>
      %122 = vector.shape_cast %121 : vector<8x1xf32> to vector<8x1xf32>
      %123 = vector.broadcast %122 : vector<8x1xf32> to vector<8x128xf32>
      %c9_41 = arith.constant 9 : index
      %c0_42 = arith.constant 0 : index
      %124 = vector.load %arg4[%c9_41, %c0_42] : memref<24x256xf32, #tpu.memory_space<vmem>>, vector<1x128xf32>
      %125 = vector.broadcast %124 : vector<1x128xf32> to vector<8x128xf32>
      %126 = arith.addf %123, %125 : vector<8x128xf32>
      %127 = arith.minimumf %115, %126 : vector<8x128xf32>
      %c9_43 = arith.constant 9 : index
      %c128_44 = arith.constant 128 : index
      %128 = vector.load %arg4[%c9_43, %c128_44] : memref<24x256xf32, #tpu.memory_space<vmem>>, vector<1x128xf32>
      %129 = vector.broadcast %128 : vector<1x128xf32> to vector<8x128xf32>
      %130 = arith.addf %123, %129 : vector<8x128xf32>
      %131 = arith.minimumf %119, %130 : vector<8x128xf32>
      %132 = arith.index_cast %9 : i32 to index
      %c10 = arith.constant 10 : index
      %133 = vector.load %arg3[%132, %c10] : memref<8x24xf32, #tpu.memory_space<vmem>>, vector<8x1xf32>
      %134 = vector.shape_cast %133 : vector<8x1xf32> to vector<8x1xf32>
      %135 = vector.broadcast %134 : vector<8x1xf32> to vector<8x128xf32>
      %c10_45 = arith.constant 10 : index
      %c0_46 = arith.constant 0 : index
      %136 = vector.load %arg4[%c10_45, %c0_46] : memref<24x256xf32, #tpu.memory_space<vmem>>, vector<1x128xf32>
      %137 = vector.broadcast %136 : vector<1x128xf32> to vector<8x128xf32>
      %138 = arith.addf %135, %137 : vector<8x128xf32>
      %139 = arith.minimumf %127, %138 : vector<8x128xf32>
      %c10_47 = arith.constant 10 : index
      %c128_48 = arith.constant 128 : index
      %140 = vector.load %arg4[%c10_47, %c128_48] : memref<24x256xf32, #tpu.memory_space<vmem>>, vector<1x128xf32>
      %141 = vector.broadcast %140 : vector<1x128xf32> to vector<8x128xf32>
      %142 = arith.addf %135, %141 : vector<8x128xf32>
      %143 = arith.minimumf %131, %142 : vector<8x128xf32>
      %144 = arith.index_cast %9 : i32 to index
      %c11 = arith.constant 11 : index
      %145 = vector.load %arg3[%144, %c11] : memref<8x24xf32, #tpu.memory_space<vmem>>, vector<8x1xf32>
      %146 = vector.shape_cast %145 : vector<8x1xf32> to vector<8x1xf32>
      %147 = vector.broadcast %146 : vector<8x1xf32> to vector<8x128xf32>
      %c11_49 = arith.constant 11 : index
      %c0_50 = arith.constant 0 : index
      %148 = vector.load %arg4[%c11_49, %c0_50] : memref<24x256xf32, #tpu.memory_space<vmem>>, vector<1x128xf32>
      %149 = vector.broadcast %148 : vector<1x128xf32> to vector<8x128xf32>
      %150 = arith.addf %147, %149 : vector<8x128xf32>
      %151 = arith.minimumf %139, %150 : vector<8x128xf32>
      %c11_51 = arith.constant 11 : index
      %c128_52 = arith.constant 128 : index
      %152 = vector.load %arg4[%c11_51, %c128_52] : memref<24x256xf32, #tpu.memory_space<vmem>>, vector<1x128xf32>
      %153 = vector.broadcast %152 : vector<1x128xf32> to vector<8x128xf32>
      %154 = arith.addf %147, %153 : vector<8x128xf32>
      %155 = arith.minimumf %143, %154 : vector<8x128xf32>
      %156 = arith.index_cast %9 : i32 to index
      %c12 = arith.constant 12 : index
      %157 = vector.load %arg3[%156, %c12] : memref<8x24xf32, #tpu.memory_space<vmem>>, vector<8x1xf32>
      %158 = vector.shape_cast %157 : vector<8x1xf32> to vector<8x1xf32>
      %159 = vector.broadcast %158 : vector<8x1xf32> to vector<8x128xf32>
      %c12_53 = arith.constant 12 : index
      %c0_54 = arith.constant 0 : index
      %160 = vector.load %arg4[%c12_53, %c0_54] : memref<24x256xf32, #tpu.memory_space<vmem>>, vector<1x128xf32>
      %161 = vector.broadcast %160 : vector<1x128xf32> to vector<8x128xf32>
      %162 = arith.addf %159, %161 : vector<8x128xf32>
      %163 = arith.minimumf %151, %162 : vector<8x128xf32>
      %c12_55 = arith.constant 12 : index
      %c128_56 = arith.constant 128 : index
      %164 = vector.load %arg4[%c12_55, %c128_56] : memref<24x256xf32, #tpu.memory_space<vmem>>, vector<1x128xf32>
      %165 = vector.broadcast %164 : vector<1x128xf32> to vector<8x128xf32>
      %166 = arith.addf %159, %165 : vector<8x128xf32>
      %167 = arith.minimumf %155, %166 : vector<8x128xf32>
      %168 = arith.index_cast %9 : i32 to index
      %c13 = arith.constant 13 : index
      %169 = vector.load %arg3[%168, %c13] : memref<8x24xf32, #tpu.memory_space<vmem>>, vector<8x1xf32>
      %170 = vector.shape_cast %169 : vector<8x1xf32> to vector<8x1xf32>
      %171 = vector.broadcast %170 : vector<8x1xf32> to vector<8x128xf32>
      %c13_57 = arith.constant 13 : index
      %c0_58 = arith.constant 0 : index
      %172 = vector.load %arg4[%c13_57, %c0_58] : memref<24x256xf32, #tpu.memory_space<vmem>>, vector<1x128xf32>
      %173 = vector.broadcast %172 : vector<1x128xf32> to vector<8x128xf32>
      %174 = arith.addf %171, %173 : vector<8x128xf32>
      %175 = arith.minimumf %163, %174 : vector<8x128xf32>
      %c13_59 = arith.constant 13 : index
      %c128_60 = arith.constant 128 : index
      %176 = vector.load %arg4[%c13_59, %c128_60] : memref<24x256xf32, #tpu.memory_space<vmem>>, vector<1x128xf32>
      %177 = vector.broadcast %176 : vector<1x128xf32> to vector<8x128xf32>
      %178 = arith.addf %171, %177 : vector<8x128xf32>
      %179 = arith.minimumf %167, %178 : vector<8x128xf32>
      %180 = arith.index_cast %9 : i32 to index
      %c14 = arith.constant 14 : index
      %181 = vector.load %arg3[%180, %c14] : memref<8x24xf32, #tpu.memory_space<vmem>>, vector<8x1xf32>
      %182 = vector.shape_cast %181 : vector<8x1xf32> to vector<8x1xf32>
      %183 = vector.broadcast %182 : vector<8x1xf32> to vector<8x128xf32>
      %c14_61 = arith.constant 14 : index
      %c0_62 = arith.constant 0 : index
      %184 = vector.load %arg4[%c14_61, %c0_62] : memref<24x256xf32, #tpu.memory_space<vmem>>, vector<1x128xf32>
      %185 = vector.broadcast %184 : vector<1x128xf32> to vector<8x128xf32>
      %186 = arith.addf %183, %185 : vector<8x128xf32>
      %187 = arith.minimumf %175, %186 : vector<8x128xf32>
      %c14_63 = arith.constant 14 : index
      %c128_64 = arith.constant 128 : index
      %188 = vector.load %arg4[%c14_63, %c128_64] : memref<24x256xf32, #tpu.memory_space<vmem>>, vector<1x128xf32>
      %189 = vector.broadcast %188 : vector<1x128xf32> to vector<8x128xf32>
      %190 = arith.addf %183, %189 : vector<8x128xf32>
      %191 = arith.minimumf %179, %190 : vector<8x128xf32>
      %192 = arith.index_cast %9 : i32 to index
      %c15 = arith.constant 15 : index
      %193 = vector.load %arg3[%192, %c15] : memref<8x24xf32, #tpu.memory_space<vmem>>, vector<8x1xf32>
      %194 = vector.shape_cast %193 : vector<8x1xf32> to vector<8x1xf32>
      %195 = vector.broadcast %194 : vector<8x1xf32> to vector<8x128xf32>
      %c15_65 = arith.constant 15 : index
      %c0_66 = arith.constant 0 : index
      %196 = vector.load %arg4[%c15_65, %c0_66] : memref<24x256xf32, #tpu.memory_space<vmem>>, vector<1x128xf32>
      %197 = vector.broadcast %196 : vector<1x128xf32> to vector<8x128xf32>
      %198 = arith.addf %195, %197 : vector<8x128xf32>
      %199 = arith.minimumf %187, %198 : vector<8x128xf32>
      %c15_67 = arith.constant 15 : index
      %c128_68 = arith.constant 128 : index
      %200 = vector.load %arg4[%c15_67, %c128_68] : memref<24x256xf32, #tpu.memory_space<vmem>>, vector<1x128xf32>
      %201 = vector.broadcast %200 : vector<1x128xf32> to vector<8x128xf32>
      %202 = arith.addf %195, %201 : vector<8x128xf32>
      %203 = arith.minimumf %191, %202 : vector<8x128xf32>
      %204 = arith.index_cast %9 : i32 to index
      %c16 = arith.constant 16 : index
      %205 = vector.load %arg3[%204, %c16] : memref<8x24xf32, #tpu.memory_space<vmem>>, vector<8x1xf32>
      %206 = vector.shape_cast %205 : vector<8x1xf32> to vector<8x1xf32>
      %207 = vector.broadcast %206 : vector<8x1xf32> to vector<8x128xf32>
      %c16_69 = arith.constant 16 : index
      %c0_70 = arith.constant 0 : index
      %208 = vector.load %arg4[%c16_69, %c0_70] : memref<24x256xf32, #tpu.memory_space<vmem>>, vector<1x128xf32>
      %209 = vector.broadcast %208 : vector<1x128xf32> to vector<8x128xf32>
      %210 = arith.addf %207, %209 : vector<8x128xf32>
      %211 = arith.minimumf %199, %210 : vector<8x128xf32>
      %c16_71 = arith.constant 16 : index
      %c128_72 = arith.constant 128 : index
      %212 = vector.load %arg4[%c16_71, %c128_72] : memref<24x256xf32, #tpu.memory_space<vmem>>, vector<1x128xf32>
      %213 = vector.broadcast %212 : vector<1x128xf32> to vector<8x128xf32>
      %214 = arith.addf %207, %213 : vector<8x128xf32>
      %215 = arith.minimumf %203, %214 : vector<8x128xf32>
      %216 = arith.index_cast %9 : i32 to index
      %c17 = arith.constant 17 : index
      %217 = vector.load %arg3[%216, %c17] : memref<8x24xf32, #tpu.memory_space<vmem>>, vector<8x1xf32>
      %218 = vector.shape_cast %217 : vector<8x1xf32> to vector<8x1xf32>
      %219 = vector.broadcast %218 : vector<8x1xf32> to vector<8x128xf32>
      %c17_73 = arith.constant 17 : index
      %c0_74 = arith.constant 0 : index
      %220 = vector.load %arg4[%c17_73, %c0_74] : memref<24x256xf32, #tpu.memory_space<vmem>>, vector<1x128xf32>
      %221 = vector.broadcast %220 : vector<1x128xf32> to vector<8x128xf32>
      %222 = arith.addf %219, %221 : vector<8x128xf32>
      %223 = arith.minimumf %211, %222 : vector<8x128xf32>
      %c17_75 = arith.constant 17 : index
      %c128_76 = arith.constant 128 : index
      %224 = vector.load %arg4[%c17_75, %c128_76] : memref<24x256xf32, #tpu.memory_space<vmem>>, vector<1x128xf32>
      %225 = vector.broadcast %224 : vector<1x128xf32> to vector<8x128xf32>
      %226 = arith.addf %219, %225 : vector<8x128xf32>
      %227 = arith.minimumf %215, %226 : vector<8x128xf32>
      %228 = arith.index_cast %9 : i32 to index
      %c18 = arith.constant 18 : index
      %229 = vector.load %arg3[%228, %c18] : memref<8x24xf32, #tpu.memory_space<vmem>>, vector<8x1xf32>
      %230 = vector.shape_cast %229 : vector<8x1xf32> to vector<8x1xf32>
      %231 = vector.broadcast %230 : vector<8x1xf32> to vector<8x128xf32>
      %c18_77 = arith.constant 18 : index
      %c0_78 = arith.constant 0 : index
      %232 = vector.load %arg4[%c18_77, %c0_78] : memref<24x256xf32, #tpu.memory_space<vmem>>, vector<1x128xf32>
      %233 = vector.broadcast %232 : vector<1x128xf32> to vector<8x128xf32>
      %234 = arith.addf %231, %233 : vector<8x128xf32>
      %235 = arith.minimumf %223, %234 : vector<8x128xf32>
      %c18_79 = arith.constant 18 : index
      %c128_80 = arith.constant 128 : index
      %236 = vector.load %arg4[%c18_79, %c128_80] : memref<24x256xf32, #tpu.memory_space<vmem>>, vector<1x128xf32>
      %237 = vector.broadcast %236 : vector<1x128xf32> to vector<8x128xf32>
      %238 = arith.addf %231, %237 : vector<8x128xf32>
      %239 = arith.minimumf %227, %238 : vector<8x128xf32>
      %240 = arith.index_cast %9 : i32 to index
      %c19 = arith.constant 19 : index
      %241 = vector.load %arg3[%240, %c19] : memref<8x24xf32, #tpu.memory_space<vmem>>, vector<8x1xf32>
      %242 = vector.shape_cast %241 : vector<8x1xf32> to vector<8x1xf32>
      %243 = vector.broadcast %242 : vector<8x1xf32> to vector<8x128xf32>
      %c19_81 = arith.constant 19 : index
      %c0_82 = arith.constant 0 : index
      %244 = vector.load %arg4[%c19_81, %c0_82] : memref<24x256xf32, #tpu.memory_space<vmem>>, vector<1x128xf32>
      %245 = vector.broadcast %244 : vector<1x128xf32> to vector<8x128xf32>
      %246 = arith.addf %243, %245 : vector<8x128xf32>
      %247 = arith.minimumf %235, %246 : vector<8x128xf32>
      %c19_83 = arith.constant 19 : index
      %c128_84 = arith.constant 128 : index
      %248 = vector.load %arg4[%c19_83, %c128_84] : memref<24x256xf32, #tpu.memory_space<vmem>>, vector<1x128xf32>
      %249 = vector.broadcast %248 : vector<1x128xf32> to vector<8x128xf32>
      %250 = arith.addf %243, %249 : vector<8x128xf32>
      %251 = arith.minimumf %239, %250 : vector<8x128xf32>
      %252 = arith.index_cast %9 : i32 to index
      %c20 = arith.constant 20 : index
      %253 = vector.load %arg3[%252, %c20] : memref<8x24xf32, #tpu.memory_space<vmem>>, vector<8x1xf32>
      %254 = vector.shape_cast %253 : vector<8x1xf32> to vector<8x1xf32>
      %255 = vector.broadcast %254 : vector<8x1xf32> to vector<8x128xf32>
      %c20_85 = arith.constant 20 : index
      %c0_86 = arith.constant 0 : index
      %256 = vector.load %arg4[%c20_85, %c0_86] : memref<24x256xf32, #tpu.memory_space<vmem>>, vector<1x128xf32>
      %257 = vector.broadcast %256 : vector<1x128xf32> to vector<8x128xf32>
      %258 = arith.addf %255, %257 : vector<8x128xf32>
      %259 = arith.minimumf %247, %258 : vector<8x128xf32>
      %c20_87 = arith.constant 20 : index
      %c128_88 = arith.constant 128 : index
      %260 = vector.load %arg4[%c20_87, %c128_88] : memref<24x256xf32, #tpu.memory_space<vmem>>, vector<1x128xf32>
      %261 = vector.broadcast %260 : vector<1x128xf32> to vector<8x128xf32>
      %262 = arith.addf %255, %261 : vector<8x128xf32>
      %263 = arith.minimumf %251, %262 : vector<8x128xf32>
      %264 = arith.index_cast %9 : i32 to index
      %c21 = arith.constant 21 : index
      %265 = vector.load %arg3[%264, %c21] : memref<8x24xf32, #tpu.memory_space<vmem>>, vector<8x1xf32>
      %266 = vector.shape_cast %265 : vector<8x1xf32> to vector<8x1xf32>
      %267 = vector.broadcast %266 : vector<8x1xf32> to vector<8x128xf32>
      %c21_89 = arith.constant 21 : index
      %c0_90 = arith.constant 0 : index
      %268 = vector.load %arg4[%c21_89, %c0_90] : memref<24x256xf32, #tpu.memory_space<vmem>>, vector<1x128xf32>
      %269 = vector.broadcast %268 : vector<1x128xf32> to vector<8x128xf32>
      %270 = arith.addf %267, %269 : vector<8x128xf32>
      %271 = arith.minimumf %259, %270 : vector<8x128xf32>
      %c21_91 = arith.constant 21 : index
      %c128_92 = arith.constant 128 : index
      %272 = vector.load %arg4[%c21_91, %c128_92] : memref<24x256xf32, #tpu.memory_space<vmem>>, vector<1x128xf32>
      %273 = vector.broadcast %272 : vector<1x128xf32> to vector<8x128xf32>
      %274 = arith.addf %267, %273 : vector<8x128xf32>
      %275 = arith.minimumf %263, %274 : vector<8x128xf32>
      %276 = arith.index_cast %9 : i32 to index
      %c22 = arith.constant 22 : index
      %277 = vector.load %arg3[%276, %c22] : memref<8x24xf32, #tpu.memory_space<vmem>>, vector<8x1xf32>
      %278 = vector.shape_cast %277 : vector<8x1xf32> to vector<8x1xf32>
      %279 = vector.broadcast %278 : vector<8x1xf32> to vector<8x128xf32>
      %c22_93 = arith.constant 22 : index
      %c0_94 = arith.constant 0 : index
      %280 = vector.load %arg4[%c22_93, %c0_94] : memref<24x256xf32, #tpu.memory_space<vmem>>, vector<1x128xf32>
      %281 = vector.broadcast %280 : vector<1x128xf32> to vector<8x128xf32>
      %282 = arith.addf %279, %281 : vector<8x128xf32>
      %283 = arith.minimumf %271, %282 : vector<8x128xf32>
      %c22_95 = arith.constant 22 : index
      %c128_96 = arith.constant 128 : index
      %284 = vector.load %arg4[%c22_95, %c128_96] : memref<24x256xf32, #tpu.memory_space<vmem>>, vector<1x128xf32>
      %285 = vector.broadcast %284 : vector<1x128xf32> to vector<8x128xf32>
      %286 = arith.addf %279, %285 : vector<8x128xf32>
      %287 = arith.minimumf %275, %286 : vector<8x128xf32>
      %288 = arith.index_cast %9 : i32 to index
      %c23 = arith.constant 23 : index
      %289 = vector.load %arg3[%288, %c23] : memref<8x24xf32, #tpu.memory_space<vmem>>, vector<8x1xf32>
      %290 = vector.shape_cast %289 : vector<8x1xf32> to vector<8x1xf32>
      %291 = vector.broadcast %290 : vector<8x1xf32> to vector<8x128xf32>
      %c23_97 = arith.constant 23 : index
      %c0_98 = arith.constant 0 : index
      %292 = vector.load %arg4[%c23_97, %c0_98] : memref<24x256xf32, #tpu.memory_space<vmem>>, vector<1x128xf32>
      %293 = vector.broadcast %292 : vector<1x128xf32> to vector<8x128xf32>
      %294 = arith.addf %291, %293 : vector<8x128xf32>
      %295 = arith.minimumf %283, %294 : vector<8x128xf32>
      %c23_99 = arith.constant 23 : index
      %c128_100 = arith.constant 128 : index
      %296 = vector.load %arg4[%c23_99, %c128_100] : memref<24x256xf32, #tpu.memory_space<vmem>>, vector<1x128xf32>
      %297 = vector.broadcast %296 : vector<1x128xf32> to vector<8x128xf32>
      %298 = arith.addf %291, %297 : vector<8x128xf32>
      %299 = arith.minimumf %287, %298 : vector<8x128xf32>
      %300 = arith.index_cast %9 : i32 to index
      %c0_101 = arith.constant 0 : index
      %301 = vector.load %arg5[%300, %c0_101] : memref<8x256xf32, #tpu.memory_space<vmem>>, vector<8x128xf32>
      tpu.vector_store %arg5[%300, %c0_101], %295 {strides = array<i32>} : memref<8x256xf32, #tpu.memory_space<vmem>>, vector<8x128xf32>,
      %302 = arith.index_cast %9 : i32 to index
      %c128_102 = arith.constant 128 : index
      %303 = vector.load %arg5[%302, %c128_102] : memref<8x256xf32, #tpu.memory_space<vmem>>, vector<8x128xf32>
      tpu.vector_store %arg5[%302, %c128_102], %299 {strides = array<i32>} : memref<8x256xf32, #tpu.memory_space<vmem>>, vector<8x128xf32>,
      %c1_i32_103 = arith.constant 1 : i32
    } else {
    }
    %c1_i32_0 = arith.constant 1 : i32
    %3 = arith.cmpi sge, %arg1, %c1_i32_0 : i32
    %4 = arith.extui %3 : i1 to i32
    %c0_i32_1 = arith.constant 0 : i32
    %5 = arith.cmpi ne, %4, %c0_i32_1 : i32
    scf.if %5 {
      %c0_i32_2 = arith.constant 0 : i32
      %c1_i32_3 = arith.constant 1 : i32
      %6 = arith.muli %c0_i32_2, %c1_i32_3 : i32
      %c0_i32_4 = arith.constant 0 : i32
      %7 = arith.addi %c0_i32_4, %6 : i32
      %c8_i32 = arith.constant 8 : i32
      %8 = arith.muli %7, %c8_i32 : i32
      %9 = tpu.assume_multiple %8, 8 : i32
      %cst = arith.constant -1.000000e+30 : f32
      %10 = vector.broadcast %cst : f32 to vector<8x128xf32>
      %cst_5 = arith.constant -1.000000e+30 : f32
      %11 = vector.broadcast %cst_5 : f32 to vector<8x128xf32>
      %12 = arith.index_cast %9 : i32 to index
      %c0 = arith.constant 0 : index
      %13 = vector.load %arg3[%12, %c0] : memref<8x24xf32, #tpu.memory_space<vmem>>, vector<8x1xf32>
      %14 = vector.shape_cast %13 : vector<8x1xf32> to vector<8x1xf32>
      %15 = vector.broadcast %14 : vector<8x1xf32> to vector<8x128xf32>
      %c0_6 = arith.constant 0 : index
      %c0_7 = arith.constant 0 : index
      %16 = vector.load %arg4[%c0_6, %c0_7] : memref<24x256xf32, #tpu.memory_space<vmem>>, vector<1x128xf32>
      %17 = vector.broadcast %16 : vector<1x128xf32> to vector<8x128xf32>
      %18 = arith.addf %15, %17 : vector<8x128xf32>
      %19 = arith.maximumf %10, %18 : vector<8x128xf32>
      %c0_8 = arith.constant 0 : index
      %c128 = arith.constant 128 : index
      %20 = vector.load %arg4[%c0_8, %c128] : memref<24x256xf32, #tpu.memory_space<vmem>>, vector<1x128xf32>
      %21 = vector.broadcast %20 : vector<1x128xf32> to vector<8x128xf32>
      %22 = arith.addf %15, %21 : vector<8x128xf32>
      %23 = arith.maximumf %11, %22 : vector<8x128xf32>
      %24 = arith.index_cast %9 : i32 to index
      %c1 = arith.constant 1 : index
      %25 = vector.load %arg3[%24, %c1] : memref<8x24xf32, #tpu.memory_space<vmem>>, vector<8x1xf32>
      %26 = vector.shape_cast %25 : vector<8x1xf32> to vector<8x1xf32>
      %27 = vector.broadcast %26 : vector<8x1xf32> to vector<8x128xf32>
      %c1_9 = arith.constant 1 : index
      %c0_10 = arith.constant 0 : index
      %28 = vector.load %arg4[%c1_9, %c0_10] : memref<24x256xf32, #tpu.memory_space<vmem>>, vector<1x128xf32>
      %29 = vector.broadcast %28 : vector<1x128xf32> to vector<8x128xf32>
      %30 = arith.addf %27, %29 : vector<8x128xf32>
      %31 = arith.maximumf %19, %30 : vector<8x128xf32>
      %c1_11 = arith.constant 1 : index
      %c128_12 = arith.constant 128 : index
      %32 = vector.load %arg4[%c1_11, %c128_12] : memref<24x256xf32, #tpu.memory_space<vmem>>, vector<1x128xf32>
      %33 = vector.broadcast %32 : vector<1x128xf32> to vector<8x128xf32>
      %34 = arith.addf %27, %33 : vector<8x128xf32>
      %35 = arith.maximumf %23, %34 : vector<8x128xf32>
      %36 = arith.index_cast %9 : i32 to index
      %c2 = arith.constant 2 : index
      %37 = vector.load %arg3[%36, %c2] : memref<8x24xf32, #tpu.memory_space<vmem>>, vector<8x1xf32>
      %38 = vector.shape_cast %37 : vector<8x1xf32> to vector<8x1xf32>
      %39 = vector.broadcast %38 : vector<8x1xf32> to vector<8x128xf32>
      %c2_13 = arith.constant 2 : index
      %c0_14 = arith.constant 0 : index
      %40 = vector.load %arg4[%c2_13, %c0_14] : memref<24x256xf32, #tpu.memory_space<vmem>>, vector<1x128xf32>
      %41 = vector.broadcast %40 : vector<1x128xf32> to vector<8x128xf32>
      %42 = arith.addf %39, %41 : vector<8x128xf32>
      %43 = arith.maximumf %31, %42 : vector<8x128xf32>
      %c2_15 = arith.constant 2 : index
      %c128_16 = arith.constant 128 : index
      %44 = vector.load %arg4[%c2_15, %c128_16] : memref<24x256xf32, #tpu.memory_space<vmem>>, vector<1x128xf32>
      %45 = vector.broadcast %44 : vector<1x128xf32> to vector<8x128xf32>
      %46 = arith.addf %39, %45 : vector<8x128xf32>
      %47 = arith.maximumf %35, %46 : vector<8x128xf32>
      %48 = arith.index_cast %9 : i32 to index
      %c3 = arith.constant 3 : index
      %49 = vector.load %arg3[%48, %c3] : memref<8x24xf32, #tpu.memory_space<vmem>>, vector<8x1xf32>
      %50 = vector.shape_cast %49 : vector<8x1xf32> to vector<8x1xf32>
      %51 = vector.broadcast %50 : vector<8x1xf32> to vector<8x128xf32>
      %c3_17 = arith.constant 3 : index
      %c0_18 = arith.constant 0 : index
      %52 = vector.load %arg4[%c3_17, %c0_18] : memref<24x256xf32, #tpu.memory_space<vmem>>, vector<1x128xf32>
      %53 = vector.broadcast %52 : vector<1x128xf32> to vector<8x128xf32>
      %54 = arith.addf %51, %53 : vector<8x128xf32>
      %55 = arith.maximumf %43, %54 : vector<8x128xf32>
      %c3_19 = arith.constant 3 : index
      %c128_20 = arith.constant 128 : index
      %56 = vector.load %arg4[%c3_19, %c128_20] : memref<24x256xf32, #tpu.memory_space<vmem>>, vector<1x128xf32>
      %57 = vector.broadcast %56 : vector<1x128xf32> to vector<8x128xf32>
      %58 = arith.addf %51, %57 : vector<8x128xf32>
      %59 = arith.maximumf %47, %58 : vector<8x128xf32>
      %60 = arith.index_cast %9 : i32 to index
      %c4 = arith.constant 4 : index
      %61 = vector.load %arg3[%60, %c4] : memref<8x24xf32, #tpu.memory_space<vmem>>, vector<8x1xf32>
      %62 = vector.shape_cast %61 : vector<8x1xf32> to vector<8x1xf32>
      %63 = vector.broadcast %62 : vector<8x1xf32> to vector<8x128xf32>
      %c4_21 = arith.constant 4 : index
      %c0_22 = arith.constant 0 : index
      %64 = vector.load %arg4[%c4_21, %c0_22] : memref<24x256xf32, #tpu.memory_space<vmem>>, vector<1x128xf32>
      %65 = vector.broadcast %64 : vector<1x128xf32> to vector<8x128xf32>
      %66 = arith.addf %63, %65 : vector<8x128xf32>
      %67 = arith.maximumf %55, %66 : vector<8x128xf32>
      %c4_23 = arith.constant 4 : index
      %c128_24 = arith.constant 128 : index
      %68 = vector.load %arg4[%c4_23, %c128_24] : memref<24x256xf32, #tpu.memory_space<vmem>>, vector<1x128xf32>
      %69 = vector.broadcast %68 : vector<1x128xf32> to vector<8x128xf32>
      %70 = arith.addf %63, %69 : vector<8x128xf32>
      %71 = arith.maximumf %59, %70 : vector<8x128xf32>
      %72 = arith.index_cast %9 : i32 to index
      %c5 = arith.constant 5 : index
      %73 = vector.load %arg3[%72, %c5] : memref<8x24xf32, #tpu.memory_space<vmem>>, vector<8x1xf32>
      %74 = vector.shape_cast %73 : vector<8x1xf32> to vector<8x1xf32>
      %75 = vector.broadcast %74 : vector<8x1xf32> to vector<8x128xf32>
      %c5_25 = arith.constant 5 : index
      %c0_26 = arith.constant 0 : index
      %76 = vector.load %arg4[%c5_25, %c0_26] : memref<24x256xf32, #tpu.memory_space<vmem>>, vector<1x128xf32>
      %77 = vector.broadcast %76 : vector<1x128xf32> to vector<8x128xf32>
      %78 = arith.addf %75, %77 : vector<8x128xf32>
      %79 = arith.maximumf %67, %78 : vector<8x128xf32>
      %c5_27 = arith.constant 5 : index
      %c128_28 = arith.constant 128 : index
      %80 = vector.load %arg4[%c5_27, %c128_28] : memref<24x256xf32, #tpu.memory_space<vmem>>, vector<1x128xf32>
      %81 = vector.broadcast %80 : vector<1x128xf32> to vector<8x128xf32>
      %82 = arith.addf %75, %81 : vector<8x128xf32>
      %83 = arith.maximumf %71, %82 : vector<8x128xf32>
      %84 = arith.index_cast %9 : i32 to index
      %c6 = arith.constant 6 : index
      %85 = vector.load %arg3[%84, %c6] : memref<8x24xf32, #tpu.memory_space<vmem>>, vector<8x1xf32>
      %86 = vector.shape_cast %85 : vector<8x1xf32> to vector<8x1xf32>
      %87 = vector.broadcast %86 : vector<8x1xf32> to vector<8x128xf32>
      %c6_29 = arith.constant 6 : index
      %c0_30 = arith.constant 0 : index
      %88 = vector.load %arg4[%c6_29, %c0_30] : memref<24x256xf32, #tpu.memory_space<vmem>>, vector<1x128xf32>
      %89 = vector.broadcast %88 : vector<1x128xf32> to vector<8x128xf32>
      %90 = arith.addf %87, %89 : vector<8x128xf32>
      %91 = arith.maximumf %79, %90 : vector<8x128xf32>
      %c6_31 = arith.constant 6 : index
      %c128_32 = arith.constant 128 : index
      %92 = vector.load %arg4[%c6_31, %c128_32] : memref<24x256xf32, #tpu.memory_space<vmem>>, vector<1x128xf32>
      %93 = vector.broadcast %92 : vector<1x128xf32> to vector<8x128xf32>
      %94 = arith.addf %87, %93 : vector<8x128xf32>
      %95 = arith.maximumf %83, %94 : vector<8x128xf32>
      %96 = arith.index_cast %9 : i32 to index
      %c7 = arith.constant 7 : index
      %97 = vector.load %arg3[%96, %c7] : memref<8x24xf32, #tpu.memory_space<vmem>>, vector<8x1xf32>
      %98 = vector.shape_cast %97 : vector<8x1xf32> to vector<8x1xf32>
      %99 = vector.broadcast %98 : vector<8x1xf32> to vector<8x128xf32>
      %c7_33 = arith.constant 7 : index
      %c0_34 = arith.constant 0 : index
      %100 = vector.load %arg4[%c7_33, %c0_34] : memref<24x256xf32, #tpu.memory_space<vmem>>, vector<1x128xf32>
      %101 = vector.broadcast %100 : vector<1x128xf32> to vector<8x128xf32>
      %102 = arith.addf %99, %101 : vector<8x128xf32>
      %103 = arith.maximumf %91, %102 : vector<8x128xf32>
      %c7_35 = arith.constant 7 : index
      %c128_36 = arith.constant 128 : index
      %104 = vector.load %arg4[%c7_35, %c128_36] : memref<24x256xf32, #tpu.memory_space<vmem>>, vector<1x128xf32>
      %105 = vector.broadcast %104 : vector<1x128xf32> to vector<8x128xf32>
      %106 = arith.addf %99, %105 : vector<8x128xf32>
      %107 = arith.maximumf %95, %106 : vector<8x128xf32>
      %108 = arith.index_cast %9 : i32 to index
      %c8 = arith.constant 8 : index
      %109 = vector.load %arg3[%108, %c8] : memref<8x24xf32, #tpu.memory_space<vmem>>, vector<8x1xf32>
      %110 = vector.shape_cast %109 : vector<8x1xf32> to vector<8x1xf32>
      %111 = vector.broadcast %110 : vector<8x1xf32> to vector<8x128xf32>
      %c8_37 = arith.constant 8 : index
      %c0_38 = arith.constant 0 : index
      %112 = vector.load %arg4[%c8_37, %c0_38] : memref<24x256xf32, #tpu.memory_space<vmem>>, vector<1x128xf32>
      %113 = vector.broadcast %112 : vector<1x128xf32> to vector<8x128xf32>
      %114 = arith.addf %111, %113 : vector<8x128xf32>
      %115 = arith.maximumf %103, %114 : vector<8x128xf32>
      %c8_39 = arith.constant 8 : index
      %c128_40 = arith.constant 128 : index
      %116 = vector.load %arg4[%c8_39, %c128_40] : memref<24x256xf32, #tpu.memory_space<vmem>>, vector<1x128xf32>
      %117 = vector.broadcast %116 : vector<1x128xf32> to vector<8x128xf32>
      %118 = arith.addf %111, %117 : vector<8x128xf32>
      %119 = arith.maximumf %107, %118 : vector<8x128xf32>
      %120 = arith.index_cast %9 : i32 to index
      %c9 = arith.constant 9 : index
      %121 = vector.load %arg3[%120, %c9] : memref<8x24xf32, #tpu.memory_space<vmem>>, vector<8x1xf32>
      %122 = vector.shape_cast %121 : vector<8x1xf32> to vector<8x1xf32>
      %123 = vector.broadcast %122 : vector<8x1xf32> to vector<8x128xf32>
      %c9_41 = arith.constant 9 : index
      %c0_42 = arith.constant 0 : index
      %124 = vector.load %arg4[%c9_41, %c0_42] : memref<24x256xf32, #tpu.memory_space<vmem>>, vector<1x128xf32>
      %125 = vector.broadcast %124 : vector<1x128xf32> to vector<8x128xf32>
      %126 = arith.addf %123, %125 : vector<8x128xf32>
      %127 = arith.maximumf %115, %126 : vector<8x128xf32>
      %c9_43 = arith.constant 9 : index
      %c128_44 = arith.constant 128 : index
      %128 = vector.load %arg4[%c9_43, %c128_44] : memref<24x256xf32, #tpu.memory_space<vmem>>, vector<1x128xf32>
      %129 = vector.broadcast %128 : vector<1x128xf32> to vector<8x128xf32>
      %130 = arith.addf %123, %129 : vector<8x128xf32>
      %131 = arith.maximumf %119, %130 : vector<8x128xf32>
      %132 = arith.index_cast %9 : i32 to index
      %c10 = arith.constant 10 : index
      %133 = vector.load %arg3[%132, %c10] : memref<8x24xf32, #tpu.memory_space<vmem>>, vector<8x1xf32>
      %134 = vector.shape_cast %133 : vector<8x1xf32> to vector<8x1xf32>
      %135 = vector.broadcast %134 : vector<8x1xf32> to vector<8x128xf32>
      %c10_45 = arith.constant 10 : index
      %c0_46 = arith.constant 0 : index
      %136 = vector.load %arg4[%c10_45, %c0_46] : memref<24x256xf32, #tpu.memory_space<vmem>>, vector<1x128xf32>
      %137 = vector.broadcast %136 : vector<1x128xf32> to vector<8x128xf32>
      %138 = arith.addf %135, %137 : vector<8x128xf32>
      %139 = arith.maximumf %127, %138 : vector<8x128xf32>
      %c10_47 = arith.constant 10 : index
      %c128_48 = arith.constant 128 : index
      %140 = vector.load %arg4[%c10_47, %c128_48] : memref<24x256xf32, #tpu.memory_space<vmem>>, vector<1x128xf32>
      %141 = vector.broadcast %140 : vector<1x128xf32> to vector<8x128xf32>
      %142 = arith.addf %135, %141 : vector<8x128xf32>
      %143 = arith.maximumf %131, %142 : vector<8x128xf32>
      %144 = arith.index_cast %9 : i32 to index
      %c11 = arith.constant 11 : index
      %145 = vector.load %arg3[%144, %c11] : memref<8x24xf32, #tpu.memory_space<vmem>>, vector<8x1xf32>
      %146 = vector.shape_cast %145 : vector<8x1xf32> to vector<8x1xf32>
      %147 = vector.broadcast %146 : vector<8x1xf32> to vector<8x128xf32>
      %c11_49 = arith.constant 11 : index
      %c0_50 = arith.constant 0 : index
      %148 = vector.load %arg4[%c11_49, %c0_50] : memref<24x256xf32, #tpu.memory_space<vmem>>, vector<1x128xf32>
      %149 = vector.broadcast %148 : vector<1x128xf32> to vector<8x128xf32>
      %150 = arith.addf %147, %149 : vector<8x128xf32>
      %151 = arith.maximumf %139, %150 : vector<8x128xf32>
      %c11_51 = arith.constant 11 : index
      %c128_52 = arith.constant 128 : index
      %152 = vector.load %arg4[%c11_51, %c128_52] : memref<24x256xf32, #tpu.memory_space<vmem>>, vector<1x128xf32>
      %153 = vector.broadcast %152 : vector<1x128xf32> to vector<8x128xf32>
      %154 = arith.addf %147, %153 : vector<8x128xf32>
      %155 = arith.maximumf %143, %154 : vector<8x128xf32>
      %156 = arith.index_cast %9 : i32 to index
      %c12 = arith.constant 12 : index
      %157 = vector.load %arg3[%156, %c12] : memref<8x24xf32, #tpu.memory_space<vmem>>, vector<8x1xf32>
      %158 = vector.shape_cast %157 : vector<8x1xf32> to vector<8x1xf32>
      %159 = vector.broadcast %158 : vector<8x1xf32> to vector<8x128xf32>
      %c12_53 = arith.constant 12 : index
      %c0_54 = arith.constant 0 : index
      %160 = vector.load %arg4[%c12_53, %c0_54] : memref<24x256xf32, #tpu.memory_space<vmem>>, vector<1x128xf32>
      %161 = vector.broadcast %160 : vector<1x128xf32> to vector<8x128xf32>
      %162 = arith.addf %159, %161 : vector<8x128xf32>
      %163 = arith.maximumf %151, %162 : vector<8x128xf32>
      %c12_55 = arith.constant 12 : index
      %c128_56 = arith.constant 128 : index
      %164 = vector.load %arg4[%c12_55, %c128_56] : memref<24x256xf32, #tpu.memory_space<vmem>>, vector<1x128xf32>
      %165 = vector.broadcast %164 : vector<1x128xf32> to vector<8x128xf32>
      %166 = arith.addf %159, %165 : vector<8x128xf32>
      %167 = arith.maximumf %155, %166 : vector<8x128xf32>
      %168 = arith.index_cast %9 : i32 to index
      %c13 = arith.constant 13 : index
      %169 = vector.load %arg3[%168, %c13] : memref<8x24xf32, #tpu.memory_space<vmem>>, vector<8x1xf32>
      %170 = vector.shape_cast %169 : vector<8x1xf32> to vector<8x1xf32>
      %171 = vector.broadcast %170 : vector<8x1xf32> to vector<8x128xf32>
      %c13_57 = arith.constant 13 : index
      %c0_58 = arith.constant 0 : index
      %172 = vector.load %arg4[%c13_57, %c0_58] : memref<24x256xf32, #tpu.memory_space<vmem>>, vector<1x128xf32>
      %173 = vector.broadcast %172 : vector<1x128xf32> to vector<8x128xf32>
      %174 = arith.addf %171, %173 : vector<8x128xf32>
      %175 = arith.maximumf %163, %174 : vector<8x128xf32>
      %c13_59 = arith.constant 13 : index
      %c128_60 = arith.constant 128 : index
      %176 = vector.load %arg4[%c13_59, %c128_60] : memref<24x256xf32, #tpu.memory_space<vmem>>, vector<1x128xf32>
      %177 = vector.broadcast %176 : vector<1x128xf32> to vector<8x128xf32>
      %178 = arith.addf %171, %177 : vector<8x128xf32>
      %179 = arith.maximumf %167, %178 : vector<8x128xf32>
      %180 = arith.index_cast %9 : i32 to index
      %c14 = arith.constant 14 : index
      %181 = vector.load %arg3[%180, %c14] : memref<8x24xf32, #tpu.memory_space<vmem>>, vector<8x1xf32>
      %182 = vector.shape_cast %181 : vector<8x1xf32> to vector<8x1xf32>
      %183 = vector.broadcast %182 : vector<8x1xf32> to vector<8x128xf32>
      %c14_61 = arith.constant 14 : index
      %c0_62 = arith.constant 0 : index
      %184 = vector.load %arg4[%c14_61, %c0_62] : memref<24x256xf32, #tpu.memory_space<vmem>>, vector<1x128xf32>
      %185 = vector.broadcast %184 : vector<1x128xf32> to vector<8x128xf32>
      %186 = arith.addf %183, %185 : vector<8x128xf32>
      %187 = arith.maximumf %175, %186 : vector<8x128xf32>
      %c14_63 = arith.constant 14 : index
      %c128_64 = arith.constant 128 : index
      %188 = vector.load %arg4[%c14_63, %c128_64] : memref<24x256xf32, #tpu.memory_space<vmem>>, vector<1x128xf32>
      %189 = vector.broadcast %188 : vector<1x128xf32> to vector<8x128xf32>
      %190 = arith.addf %183, %189 : vector<8x128xf32>
      %191 = arith.maximumf %179, %190 : vector<8x128xf32>
      %192 = arith.index_cast %9 : i32 to index
      %c15 = arith.constant 15 : index
      %193 = vector.load %arg3[%192, %c15] : memref<8x24xf32, #tpu.memory_space<vmem>>, vector<8x1xf32>
      %194 = vector.shape_cast %193 : vector<8x1xf32> to vector<8x1xf32>
      %195 = vector.broadcast %194 : vector<8x1xf32> to vector<8x128xf32>
      %c15_65 = arith.constant 15 : index
      %c0_66 = arith.constant 0 : index
      %196 = vector.load %arg4[%c15_65, %c0_66] : memref<24x256xf32, #tpu.memory_space<vmem>>, vector<1x128xf32>
      %197 = vector.broadcast %196 : vector<1x128xf32> to vector<8x128xf32>
      %198 = arith.addf %195, %197 : vector<8x128xf32>
      %199 = arith.maximumf %187, %198 : vector<8x128xf32>
      %c15_67 = arith.constant 15 : index
      %c128_68 = arith.constant 128 : index
      %200 = vector.load %arg4[%c15_67, %c128_68] : memref<24x256xf32, #tpu.memory_space<vmem>>, vector<1x128xf32>
      %201 = vector.broadcast %200 : vector<1x128xf32> to vector<8x128xf32>
      %202 = arith.addf %195, %201 : vector<8x128xf32>
      %203 = arith.maximumf %191, %202 : vector<8x128xf32>
      %204 = arith.index_cast %9 : i32 to index
      %c16 = arith.constant 16 : index
      %205 = vector.load %arg3[%204, %c16] : memref<8x24xf32, #tpu.memory_space<vmem>>, vector<8x1xf32>
      %206 = vector.shape_cast %205 : vector<8x1xf32> to vector<8x1xf32>
      %207 = vector.broadcast %206 : vector<8x1xf32> to vector<8x128xf32>
      %c16_69 = arith.constant 16 : index
      %c0_70 = arith.constant 0 : index
      %208 = vector.load %arg4[%c16_69, %c0_70] : memref<24x256xf32, #tpu.memory_space<vmem>>, vector<1x128xf32>
      %209 = vector.broadcast %208 : vector<1x128xf32> to vector<8x128xf32>
      %210 = arith.addf %207, %209 : vector<8x128xf32>
      %211 = arith.maximumf %199, %210 : vector<8x128xf32>
      %c16_71 = arith.constant 16 : index
      %c128_72 = arith.constant 128 : index
      %212 = vector.load %arg4[%c16_71, %c128_72] : memref<24x256xf32, #tpu.memory_space<vmem>>, vector<1x128xf32>
      %213 = vector.broadcast %212 : vector<1x128xf32> to vector<8x128xf32>
      %214 = arith.addf %207, %213 : vector<8x128xf32>
      %215 = arith.maximumf %203, %214 : vector<8x128xf32>
      %216 = arith.index_cast %9 : i32 to index
      %c17 = arith.constant 17 : index
      %217 = vector.load %arg3[%216, %c17] : memref<8x24xf32, #tpu.memory_space<vmem>>, vector<8x1xf32>
      %218 = vector.shape_cast %217 : vector<8x1xf32> to vector<8x1xf32>
      %219 = vector.broadcast %218 : vector<8x1xf32> to vector<8x128xf32>
      %c17_73 = arith.constant 17 : index
      %c0_74 = arith.constant 0 : index
      %220 = vector.load %arg4[%c17_73, %c0_74] : memref<24x256xf32, #tpu.memory_space<vmem>>, vector<1x128xf32>
      %221 = vector.broadcast %220 : vector<1x128xf32> to vector<8x128xf32>
      %222 = arith.addf %219, %221 : vector<8x128xf32>
      %223 = arith.maximumf %211, %222 : vector<8x128xf32>
      %c17_75 = arith.constant 17 : index
      %c128_76 = arith.constant 128 : index
      %224 = vector.load %arg4[%c17_75, %c128_76] : memref<24x256xf32, #tpu.memory_space<vmem>>, vector<1x128xf32>
      %225 = vector.broadcast %224 : vector<1x128xf32> to vector<8x128xf32>
      %226 = arith.addf %219, %225 : vector<8x128xf32>
      %227 = arith.maximumf %215, %226 : vector<8x128xf32>
      %228 = arith.index_cast %9 : i32 to index
      %c18 = arith.constant 18 : index
      %229 = vector.load %arg3[%228, %c18] : memref<8x24xf32, #tpu.memory_space<vmem>>, vector<8x1xf32>
      %230 = vector.shape_cast %229 : vector<8x1xf32> to vector<8x1xf32>
      %231 = vector.broadcast %230 : vector<8x1xf32> to vector<8x128xf32>
      %c18_77 = arith.constant 18 : index
      %c0_78 = arith.constant 0 : index
      %232 = vector.load %arg4[%c18_77, %c0_78] : memref<24x256xf32, #tpu.memory_space<vmem>>, vector<1x128xf32>
      %233 = vector.broadcast %232 : vector<1x128xf32> to vector<8x128xf32>
      %234 = arith.addf %231, %233 : vector<8x128xf32>
      %235 = arith.maximumf %223, %234 : vector<8x128xf32>
      %c18_79 = arith.constant 18 : index
      %c128_80 = arith.constant 128 : index
      %236 = vector.load %arg4[%c18_79, %c128_80] : memref<24x256xf32, #tpu.memory_space<vmem>>, vector<1x128xf32>
      %237 = vector.broadcast %236 : vector<1x128xf32> to vector<8x128xf32>
      %238 = arith.addf %231, %237 : vector<8x128xf32>
      %239 = arith.maximumf %227, %238 : vector<8x128xf32>
      %240 = arith.index_cast %9 : i32 to index
      %c19 = arith.constant 19 : index
      %241 = vector.load %arg3[%240, %c19] : memref<8x24xf32, #tpu.memory_space<vmem>>, vector<8x1xf32>
      %242 = vector.shape_cast %241 : vector<8x1xf32> to vector<8x1xf32>
      %243 = vector.broadcast %242 : vector<8x1xf32> to vector<8x128xf32>
      %c19_81 = arith.constant 19 : index
      %c0_82 = arith.constant 0 : index
      %244 = vector.load %arg4[%c19_81, %c0_82] : memref<24x256xf32, #tpu.memory_space<vmem>>, vector<1x128xf32>
      %245 = vector.broadcast %244 : vector<1x128xf32> to vector<8x128xf32>
      %246 = arith.addf %243, %245 : vector<8x128xf32>
      %247 = arith.maximumf %235, %246 : vector<8x128xf32>
      %c19_83 = arith.constant 19 : index
      %c128_84 = arith.constant 128 : index
      %248 = vector.load %arg4[%c19_83, %c128_84] : memref<24x256xf32, #tpu.memory_space<vmem>>, vector<1x128xf32>
      %249 = vector.broadcast %248 : vector<1x128xf32> to vector<8x128xf32>
      %250 = arith.addf %243, %249 : vector<8x128xf32>
      %251 = arith.maximumf %239, %250 : vector<8x128xf32>
      %252 = arith.index_cast %9 : i32 to index
      %c20 = arith.constant 20 : index
      %253 = vector.load %arg3[%252, %c20] : memref<8x24xf32, #tpu.memory_space<vmem>>, vector<8x1xf32>
      %254 = vector.shape_cast %253 : vector<8x1xf32> to vector<8x1xf32>
      %255 = vector.broadcast %254 : vector<8x1xf32> to vector<8x128xf32>
      %c20_85 = arith.constant 20 : index
      %c0_86 = arith.constant 0 : index
      %256 = vector.load %arg4[%c20_85, %c0_86] : memref<24x256xf32, #tpu.memory_space<vmem>>, vector<1x128xf32>
      %257 = vector.broadcast %256 : vector<1x128xf32> to vector<8x128xf32>
      %258 = arith.addf %255, %257 : vector<8x128xf32>
      %259 = arith.maximumf %247, %258 : vector<8x128xf32>
      %c20_87 = arith.constant 20 : index
      %c128_88 = arith.constant 128 : index
      %260 = vector.load %arg4[%c20_87, %c128_88] : memref<24x256xf32, #tpu.memory_space<vmem>>, vector<1x128xf32>
      %261 = vector.broadcast %260 : vector<1x128xf32> to vector<8x128xf32>
      %262 = arith.addf %255, %261 : vector<8x128xf32>
      %263 = arith.maximumf %251, %262 : vector<8x128xf32>
      %264 = arith.index_cast %9 : i32 to index
      %c21 = arith.constant 21 : index
      %265 = vector.load %arg3[%264, %c21] : memref<8x24xf32, #tpu.memory_space<vmem>>, vector<8x1xf32>
      %266 = vector.shape_cast %265 : vector<8x1xf32> to vector<8x1xf32>
      %267 = vector.broadcast %266 : vector<8x1xf32> to vector<8x128xf32>
      %c21_89 = arith.constant 21 : index
      %c0_90 = arith.constant 0 : index
      %268 = vector.load %arg4[%c21_89, %c0_90] : memref<24x256xf32, #tpu.memory_space<vmem>>, vector<1x128xf32>
      %269 = vector.broadcast %268 : vector<1x128xf32> to vector<8x128xf32>
      %270 = arith.addf %267, %269 : vector<8x128xf32>
      %271 = arith.maximumf %259, %270 : vector<8x128xf32>
      %c21_91 = arith.constant 21 : index
      %c128_92 = arith.constant 128 : index
      %272 = vector.load %arg4[%c21_91, %c128_92] : memref<24x256xf32, #tpu.memory_space<vmem>>, vector<1x128xf32>
      %273 = vector.broadcast %272 : vector<1x128xf32> to vector<8x128xf32>
      %274 = arith.addf %267, %273 : vector<8x128xf32>
      %275 = arith.maximumf %263, %274 : vector<8x128xf32>
      %276 = arith.index_cast %9 : i32 to index
      %c22 = arith.constant 22 : index
      %277 = vector.load %arg3[%276, %c22] : memref<8x24xf32, #tpu.memory_space<vmem>>, vector<8x1xf32>
      %278 = vector.shape_cast %277 : vector<8x1xf32> to vector<8x1xf32>
      %279 = vector.broadcast %278 : vector<8x1xf32> to vector<8x128xf32>
      %c22_93 = arith.constant 22 : index
      %c0_94 = arith.constant 0 : index
      %280 = vector.load %arg4[%c22_93, %c0_94] : memref<24x256xf32, #tpu.memory_space<vmem>>, vector<1x128xf32>
      %281 = vector.broadcast %280 : vector<1x128xf32> to vector<8x128xf32>
      %282 = arith.addf %279, %281 : vector<8x128xf32>
      %283 = arith.maximumf %271, %282 : vector<8x128xf32>
      %c22_95 = arith.constant 22 : index
      %c128_96 = arith.constant 128 : index
      %284 = vector.load %arg4[%c22_95, %c128_96] : memref<24x256xf32, #tpu.memory_space<vmem>>, vector<1x128xf32>
      %285 = vector.broadcast %284 : vector<1x128xf32> to vector<8x128xf32>
      %286 = arith.addf %279, %285 : vector<8x128xf32>
      %287 = arith.maximumf %275, %286 : vector<8x128xf32>
      %288 = arith.index_cast %9 : i32 to index
      %c23 = arith.constant 23 : index
      %289 = vector.load %arg3[%288, %c23] : memref<8x24xf32, #tpu.memory_space<vmem>>, vector<8x1xf32>
      %290 = vector.shape_cast %289 : vector<8x1xf32> to vector<8x1xf32>
      %291 = vector.broadcast %290 : vector<8x1xf32> to vector<8x128xf32>
      %c23_97 = arith.constant 23 : index
      %c0_98 = arith.constant 0 : index
      %292 = vector.load %arg4[%c23_97, %c0_98] : memref<24x256xf32, #tpu.memory_space<vmem>>, vector<1x128xf32>
      %293 = vector.broadcast %292 : vector<1x128xf32> to vector<8x128xf32>
      %294 = arith.addf %291, %293 : vector<8x128xf32>
      %295 = arith.maximumf %283, %294 : vector<8x128xf32>
      %c23_99 = arith.constant 23 : index
      %c128_100 = arith.constant 128 : index
      %296 = vector.load %arg4[%c23_99, %c128_100] : memref<24x256xf32, #tpu.memory_space<vmem>>, vector<1x128xf32>
      %297 = vector.broadcast %296 : vector<1x128xf32> to vector<8x128xf32>
      %298 = arith.addf %291, %297 : vector<8x128xf32>
      %299 = arith.maximumf %287, %298 : vector<8x128xf32>
      %300 = arith.index_cast %9 : i32 to index
      %c0_101 = arith.constant 0 : index
      %301 = vector.load %arg5[%300, %c0_101] : memref<8x256xf32, #tpu.memory_space<vmem>>, vector<8x128xf32>
      tpu.vector_store %arg5[%300, %c0_101], %295 {strides = array<i32>} : memref<8x256xf32, #tpu.memory_space<vmem>>, vector<8x128xf32>,
      %302 = arith.index_cast %9 : i32 to index
      %c128_102 = arith.constant 128 : index
      %303 = vector.load %arg5[%302, %c128_102] : memref<8x256xf32, #tpu.memory_space<vmem>>, vector<8x128xf32>
      tpu.vector_store %arg5[%302, %c128_102], %299 {strides = array<i32>} : memref<8x256xf32, #tpu.memory_space<vmem>>, vector<8x128xf32>,
      %c1_i32_103 = arith.constant 1 : i32
    } else {
    }
    return
  }
  func.func @transform_0(%arg0: i32, %arg1: i32, %arg2: i32) -> (i32, i32) {
    %c0_i32 = arith.constant 0 : i32
    return %arg0, %arg2 : i32, i32
  }
  func.func @transform_1(%arg0: i32, %arg1: i32, %arg2: i32) -> (i32, i32) {
    %c0_i32 = arith.constant 0 : i32
    return %arg2, %arg1 : i32, i32
  }
  func.func @transform_2(%arg0: i32, %arg1: i32, %arg2: i32) -> (i32, i32) {
    %c0_i32 = arith.constant 0 : i32
    return %arg0, %arg1 : i32, i32
  }
}

</mosaic_0001>

<bundles_post_ra>
// kernel: neg.1
= control target key start
LH: loop header
LB: loop body
LE: loop exit
PB: predicated region body
PF: predicated region fallthrough
CT: control target
= control target key end

     0   :  { %2 = vsyncpa [#allocation1], 0  ;;  %s42_s6 = smov [#allocation0]   ;;  %s59_s0 = inlined_call_operand.hbm [shape: f32[17,8], index: 0, kind: input, shape index: {}]   ;;  %s60_s1 = inlined_call_operand.vmem [shape: f32[17,8], index: 1, kind: output, shape index: {}]  }
   0x1   :  { %s7_s7 = sshll.u32 %s42_s6, 4  ;;  %s8_s7 = int_to_ptr.vmem [resolvable:$true] %s7_s7 }
   0x2   :  { %s28_s8 = scalar_lea.vmem %s8_s7, 128  ;;  %p33_p1 = scmp.lt.s32.totalorder %s8_s7, %s8_s7 }
   0x3   :  { %p29_p0 = scmp.ne.s32.totalorder %s8_s7, %s28_s8  ;;  %p34_p2 = scmp.lt.s32.totalorder %s28_s8, %s28_s8 }
   0x5   :  { %p35_p3 = por %p34_p2, %p33_p1 }
   0x7   :  { %p36_p4 = pnand %p35_p3, %p29_p0 }
   0x9   :  { %39 = shalt.err (!%p36_p4)
}
   0xa   :  { %10 = dma.hbm_to_vmem [thread:$0]  %s59_s0, 128, %s8_s7, [#allocation1]  }
   0xb   :  { %40 = dma.done.wait [#allocation1], 128  }
   0xc   :  { %41 = vsyncadd [#allocation1], 4294967168  ;;  %v12_v0 = vld [vmem:[#allocation0] sm:$0xff] }
   0xd   :  { %v15_v1 = vxor.u32 2147483648, %v12_v0 }
   0xf   :  { %17 = vst [vmem:[%s60_s1] sm:$0xff] %v15_v1 }
  0x10   :  { %18 = vsyncpa [#allocation1], 1 }

// kernel: dilate_erode.1
= control target key start
LH: loop header
LB: loop body
LE: loop exit
PB: predicated region body
PF: predicated region fallthrough
CT: control target
= control target key end

     0   :  { %s1108_s9 = smov 0   ;;  %s1110_s10 = smov 0   ;;  %s1337_s0 = inlined_call_operand.vmem [shape: f32[8,24], index: 0, kind: input, shape index: {}]   ;;  %s1338_s1 = inlined_call_operand.vmem [shape: f32[24,512], index: 1, kind: input, shape index: {}]   ;;  %s1339_s2 = inlined_call_operand.vmem [shape: f32[8,512], index: 2, kind: output, shape index: {}]  }
   0x1   :  { %s1112_s11 = smov 0   ;;  %s1114_s12 = smov 0  }
   0x2   :  { %s1116_s13 = smov 0  }
   0x3 LB: > { %s27_s14 = sadd.s32 1, %s1039_s12  ;;  %p75_p1 = scmp.ne.s32.totalorder %s1031_s10, %s1027_s9  ;;  %s1043_s13 = sphi %s1116_s13, %s12_s13   ;;  %s1039_s12 = sphi %s1114_s12, %s1343_s12   ;;  %s1035_s11 = sphi %s1112_s11, %s1342_s11   ;;  %s1031_s10 = sphi %s1110_s10, %s1341_s10   ;;  %s1027_s9 = sphi %s1108_s9, %s1340_s9  }
   0x4   : > { %p29_p0 = scmp.ge.s32.totalorder %s27_s14, 2  ;;  %p76_p2 = scmp.eq.s32.totalorder %s1043_s13, 0 }
   0x5   : > { %s68_s16 = sadd.s32 1, %s1031_s10  ;;  %p856_p5 = scmp.ge.s32.totalorder %s1043_s13, 2 }
   0x6   : > { %s1345_s14 = smov (%p29_p0, %s27_s14), 0  ;;  %p77_p3 = por %p76_p2, %p75_p1 }
   0x7   : > { %s64_s15 = ssub.s32 %s1039_s12, %s1345_s14  ;;  %139 = sbr.rel (%p856_p5) target bundleno = 19 (0x13), region = 20 }
   0x8   : > { %p66_p4 = scmp.eq.s32.totalorder %s64_s15, 0 }
   0xa   : > { %s1143_s17 = scalar_select %p66_p4, %s1031_s10, %s68_s16  }
   0xc   : > { %142 = sbr.rel (!%p77_p3) target bundleno = 19 (0x13), region = 24  ;;  %s144_s18 = sand.u32 (%p77_p3), 1, %s1031_s10  }
   0xd   : > { %s866_s19 = sshll.u32 (%p77_p3), %s1039_s12, 4  ;;  %s867_s20 = smul.u32 (%p77_p3), 48, %s144_s18 }
   0xe   : > { %s152_s23 = scalar_lea.vmem (%p77_p3), %s1338_s1, %s866_s19 }
   0xf   : > { %v165_v0 = vld [vmem:[%s152_s23] sm:$0xff] (%p77_p3)  ;;  %v167_v1 = vld [vmem:[%s152_s23 + $0x8] sm:$0xff] (%p77_p3)  ;;  %s146_s24 = scalar_lea.vmem (%p77_p3), [#allocation2], %s867_s20 }
  0x10   : > { %v169_v2 = vld [vmem:[%s152_s23 + $0x20] sm:$0xff] (%p77_p3)  ;;  %v171_v3 = vld [vmem:[%s152_s23 + $0x28] sm:$0xff] (%p77_p3)  ;;  %166 = vst [vmem:[%s146_s24] sm:$0xff] (%p77_p3), %v165_v0  ;;  %168 = vst [vmem:[%s146_s24 + $0x8] sm:$0xff] (%p77_p3), %v167_v1 }
  0x11   : > { %v173_v4 = vld [vmem:[%s152_s23 + $0x40] sm:$0xff]  ;;  %v175_v5 = vld [vmem:[%s152_s23 + $0x48] sm:$0xff]  ;;  %170 = vst [vmem:[%s146_s24 + $0x10] sm:$0xff] %v169_v2  ;;  %172 = vst [vmem:[%s146_s24 + $0x18] sm:$0xff] %v171_v3 }
  0x12   : > { %174 = vst [vmem:[%s146_s24 + $0x20] sm:$0xff] %v173_v4  ;;  %176 = vst [vmem:[%s146_s24 + $0x28] sm:$0xff] %v175_v5 }
  0x13 PF: > { %p859_p6 = scmp.ge.s32.totalorder %s1043_s13, 1  ;;  %p181_p7 = scmp.lt.s32.totalorder %s1043_s13, 3 }
  0x15   : > { %p182_p8 = pnand %p859_p6, %p181_p7 }
  0x16   : > { %s188_s25 = sand.u32 (!%p182_p8), 1, %s1027_s9   ;;  %s860_s26 = sshll.u32 (!%p182_p8), %s1035_s11, 1 }
  0x17   : > { %185 = sbr.rel (%p182_p8) target bundleno = 446 (0x1be), region = 47  ;;  %p232_p9 = scmp.lt.s32.totalorder (!%p182_p8), %s860_s26, 3 }
  0x18   : > { %s868_s27 = smul.u32 (!%p182_p8), 48, %s188_s25  ;;  %p862_p10 = scmp.ge.s32.totalorder (!%p182_p8), %s1035_s11, 1 }
  0x1a   : > { %s1160_s4 = scalar_lea.vmem (!%p182_p8), [#allocation2], %s868_s27 }
  0x1c   : > { %s1347_s26 = smov (!%p232_p9, %s860_s26), 3  ;;  %242 = sbr.rel (%p862_p10) target bundleno = 236 (0xec), region = 55 }
  0x1d   : > { %s861_s28 = sshll.u32 %s1347_s26, 3 }
  0x1e   : > { %s1158_s3 = scalar_lea.vmem %s1339_s2, %s861_s28 }
  0x21   : > { %v1166_v6 = vld [vmem:[%s1337_s0] sm:$0xff]  ;;  %v1045_v7 = vmov 2   ;;  %v1046_v8 = vmov 0   ;;  %v1047_v9 = vmov 3   ;;  %v1048_v10 = vmov 1  }
  0x22   : > { %959 = vset.pattern.permute.xlu1 %v1045_v7  ;;  %957 = vset.pattern.permute.xlu0 %v1046_v8  ;;  %v1049_v11 = vmov 4   ;;  %v1050_v12 = vmov 5   ;;  %v1051_v13 = vmov 6   ;;  %v1052_v14 = vmov 8   ;;  %v249_v31 = vld [vmem:[%s1160_s4] ss:$0 sm:$0xff] }
  0x23   : > { %266 = vperm.xlu1 %959, %v1166_v6   ;;  %246 = vperm.xlu0 %957, %v1166_v6   ;;  %v1053_v15 = vmov 7   ;;  %v1054_v16 = vmov 11   ;;  %v1055_v17 = vmov 9   ;;  %v1056_v18 = vmov 14   ;;  %v252_v32 = vld [vmem:[%s1160_s4 + $0x8] ss:$0 sm:$0xff] }
  0x24   : > { %v1057_v19 = vmov 10   ;;  %v1058_v20 = vmov 17   ;;  %v1059_v21 = vmov 12   ;;  %v1060_v22 = vmov 20   ;;  %v259_v37 = vld [vmem:[%s1160_s4 + $0x1] ss:$0 sm:$0xff] }
  0x25   : > { %v1061_v23 = vmov 13   ;;  %v1062_v24 = vmov 23   ;;  %v1063_v25 = vmov 15   ;;  %v1064_v26 = vmov 16   ;;  %v262_v38 = vld [vmem:[%s1160_s4 + $0x9] ss:$0 sm:$0xff] }
  0x26   : > { %v1065_v27 = vmov 18   ;;  %v1066_v28 = vmov 19   ;;  %v1067_v29 = vmov 21   ;;  %v1068_v30 = vmov 22   ;;  %v269_v41 = vld [vmem:[%s1160_s4 + $0x2] ss:$0 sm:$0xff] }
  0x27   : > { %960 = vset.pattern.permute.xlu1 %v1047_v9  ;;  %958 = vset.pattern.permute.xlu0 %v1048_v10  ;;  %v272_v42 = vld [vmem:[%s1160_s4 + $0xa] ss:$0 sm:$0xff]  ;;  %v279_v47 = vld [vmem:[%s1160_s4 + $0x3] ss:$0 sm:$0xff]  ;;  %v282_v48 = vld [vmem:[%s1160_s4 + $0xb] ss:$0 sm:$0xff] }
  0x28   : > { %276 = vperm.xlu1 %960, %v1166_v6   ;;  %256 = vperm.xlu0 %958, %v1166_v6   ;;  %v289_v53 = vld [vmem:[%s1160_s4 + $0x4] ss:$0 sm:$0xff]  ;;  %v292_v54 = vld [vmem:[%s1160_s4 + $0xc] ss:$0 sm:$0xff]  ;;  %v299_v60 = vld [vmem:[%s1160_s4 + $0x5] ss:$0 sm:$0xff] }
  0x29   : > { %v302_v61 = vld [vmem:[%s1160_s4 + $0xd] ss:$0 sm:$0xff]  ;;  %v309_v7 = vld [vmem:[%s1160_s4 + $0x6] ss:$0 sm:$0xff]  ;;  %v312_v8 = vld [vmem:[%s1160_s4 + $0xe] ss:$0 sm:$0xff] }
  0x2c   : > { %961 = vset.pattern.permute.xlu1 %v1049_v11  ;;  %962 = vset.pattern.permute.xlu0 %v1050_v12 }
  0x2d   : > { %286 = vperm.xlu1 %961, %v1166_v6   ;;  %296 = vperm.xlu0 %962, %v1166_v6  }
  0x31   : > { %963 = vset.pattern.permute.xlu1 %v1051_v13  ;;  %965 = vset.pattern.permute.xlu0 %v1052_v14  ;;  %v319_v14 = vld [vmem:[%s1160_s4 + $0x7] ss:$0 sm:$0xff] }
  0x32   : > { %306 = vperm.xlu1 %963, %v1166_v6   ;;  %326 = vperm.xlu0 %965, %v1166_v6  }
  0x36   : > { %964 = vset.pattern.permute.xlu1 %v1053_v15  ;;  %968 = vset.pattern.permute.xlu0 %v1054_v16  ;;  %v322_v15 = vld [vmem:[%s1160_s4 + $0xf] ss:$0 sm:$0xff] }
  0x37   : > { %316 = vperm.xlu1 %964, %v1166_v6   ;;  %356 = vperm.xlu0 %968, %v1166_v6  }
  0x3b   : > { %966 = vset.pattern.permute.xlu1 %v1055_v17  ;;  %971 = vset.pattern.permute.xlu0 %v1056_v18  ;;  %v329_v17 = vld [vmem:[%s1160_s4 + $0x10] ss:$0 sm:$0xff]  ;;  %v332_v18 = vld [vmem:[%s1160_s4 + $0x18] ss:$0 sm:$0xff] }
  0x3c   : > { %336 = vperm.xlu1 %966, %v1166_v6   ;;  %386 = vperm.xlu0 %971, %v1166_v6  }
  0x40   : > { %967 = vset.pattern.permute.xlu1 %v1057_v19  ;;  %974 = vset.pattern.permute.xlu0 %v1058_v20 }
  0x41   : > { %346 = vperm.xlu1 %967, %v1166_v6   ;;  %416 = vperm.xlu0 %974, %v1166_v6  }
  0x45   : > { %969 = vset.pattern.permute.xlu1 %v1059_v21  ;;  %977 = vset.pattern.permute.xlu0 %v1060_v22 }
  0x46   : > { %366 = vperm.xlu1 %969, %v1166_v6   ;;  %446 = vperm.xlu0 %977, %v1166_v6  }
  0x4a   : > { %970 = vset.pattern.permute.xlu1 %v1061_v23  ;;  %980 = vset.pattern.permute.xlu0 %v1062_v24 }
  0x4b   : > { %376 = vperm.xlu1 %970, %v1166_v6   ;;  %476 = vperm.xlu0 %980, %v1166_v6  }
  0x4f   : > { %972 = vset.pattern.permute.xlu1 %v1063_v25 }
  0x50   : > { %396 = vperm.xlu1 %972, %v1166_v6  }
  0x54   : > { %973 = vset.pattern.permute.xlu1 %v1064_v26 }
  0x55   : > { %406 = vperm.xlu1 %973, %v1166_v6  }
  0x59   : > { %975 = vset.pattern.permute.xlu1 %v1065_v27 }
  0x5a   : > { %426 = vperm.xlu1 %975, %v1166_v6  }
  0x5e   : > { %976 = vset.pattern.permute.xlu1 %v1066_v28  ;;  %v339_v28 = vld [vmem:[%s1160_s4 + $0x11] ss:$0 sm:$0xff] }
  0x5f   : > { %436 = vperm.xlu1 %976, %v1166_v6  }
  0x63   : > { %978 = vset.pattern.permute.xlu1 %v1067_v29  ;;  %v342_v29 = vld [vmem:[%s1160_s4 + $0x19] ss:$0 sm:$0xff] }
  0x64   : > { %456 = vperm.xlu1 %978, %v1166_v6  }
  0x68   : > { %979 = vset.pattern.permute.xlu1 %v1068_v30 }
  0x69   : > { %466 = vperm.xlu1 %979, %v1166_v6  }
  0x9e   : > { %v267_v33 = vpop.permute.xlu1 %266  ;;  %v247_v34 = vpop.permute.xlu0 %246 }
  0x9f   : > { %v250_v35 = vadd.f32 %v249_v31, %v247_v34  ;;  %v253_v36 = vadd.f32 %v252_v32, %v247_v34  ;;  %v270_v49 = vadd.f32 %v269_v41, %v267_v33  ;;  %v273_v50 = vadd.f32 %v272_v42, %v267_v33 }
  0xa1   : > { %v251_v39 = vmin.f32 %v250_v35, 1e+30  ;;  %v254_v40 = vmin.f32 %v253_v36, 1e+30  ;;  %v349_v35 = vld [vmem:[%s1160_s4 + $0x12] ss:$0 sm:$0xff] }
  0xa2   : > { %v352_v36 = vld [vmem:[%s1160_s4 + $0x1a] ss:$0 sm:$0xff] }
  0xa3   : > { %v277_v43 = vpop.permute.xlu1 %276  ;;  %v257_v44 = vpop.permute.xlu0 %256 }
  0xa4   : > { %v260_v45 = vadd.f32 %v259_v37, %v257_v44  ;;  %v263_v46 = vadd.f32 %v262_v38, %v257_v44  ;;  %v280_v55 = vadd.f32 %v279_v47, %v277_v43  ;;  %v283_v56 = vadd.f32 %v282_v48, %v277_v43  ;;  %v359_v38 = vld [vmem:[%s1160_s4 + $0x13] ss:$0 sm:$0xff] }
  0xa6   : > { %v261_v51 = vmin.f32 %v251_v39, %v260_v45  ;;  %v264_v52 = vmin.f32 %v254_v40, %v263_v46  ;;  %v362_v39 = vld [vmem:[%s1160_s4 + $0x1b] ss:$0 sm:$0xff] }
  0xa8   : > { %v271_v57 = vmin.f32 %v261_v51, %v270_v49  ;;  %v274_v58 = vmin.f32 %v264_v52, %v273_v50  ;;  %v287_v59 = vpop.permute.xlu1 %286  ;;  %v297_v62 = vpop.permute.xlu0 %296  ;;  %v369_v49 = vld [vmem:[%s1160_s4 + $0x14] ss:$0 sm:$0xff]  ;;  %v372_v50 = vld [vmem:[%s1160_s4 + $0x1c] ss:$0 sm:$0xff] }
  0xa9   : > { %v290_v63 = vadd.f32 %v289_v53, %v287_v59  ;;  %v293_v0 = vadd.f32 %v292_v54, %v287_v59  ;;  %v300_v3 = vadd.f32 %v299_v60, %v297_v62  ;;  %v303_v4 = vadd.f32 %v302_v61, %v297_v62  ;;  %v389_v59 = vld [vmem:[%s1160_s4 + $0x16] ss:$0 sm:$0xff]  ;;  %v392_v60 = vld [vmem:[%s1160_s4 + $0x1e] ss:$0 sm:$0xff] }
  0xaa   : > { %v281_v1 = vmin.f32 %v271_v57, %v280_v55  ;;  %v284_v2 = vmin.f32 %v274_v58, %v283_v56  ;;  %v379_v56 = vld [vmem:[%s1160_s4 + $0x15] ss:$0 sm:$0xff]  ;;  %v382_v57 = vld [vmem:[%s1160_s4 + $0x1d] ss:$0 sm:$0xff] }
  0xac   : > { %v291_v5 = vmin.f32 %v281_v1, %v290_v63  ;;  %v294_v6 = vmin.f32 %v284_v2, %v293_v0 }
  0xad   : > { %v307_v9 = vpop.permute.xlu1 %306  ;;  %v327_v19 = vpop.permute.xlu0 %326 }
  0xae   : > { %v301_v10 = vmin.f32 %v291_v5, %v300_v3  ;;  %v304_v11 = vmin.f32 %v294_v6, %v303_v4  ;;  %v310_v12 = vadd.f32 %v309_v7, %v307_v9  ;;  %v313_v13 = vadd.f32 %v312_v8, %v307_v9  ;;  %v399_v6 = vld [vmem:[%s1160_s4 + $0x17] ss:$0 sm:$0xff]  ;;  %v402_v7 = vld [vmem:[%s1160_s4 + $0x1f] ss:$0 sm:$0xff] }
  0xaf   : > { %v330_v26 = vadd.f32 %v329_v17, %v327_v19  ;;  %v333_v27 = vadd.f32 %v332_v18, %v327_v19  ;;  %v422_v17 = vld [vmem:[%s1160_s4 + $0x29] ss:$0 sm:$0xff] }
  0xb0   : > { %v311_v20 = vmin.f32 %v301_v10, %v310_v12  ;;  %v314_v21 = vmin.f32 %v304_v11, %v313_v13  ;;  %v409_v13 = vld [vmem:[%s1160_s4 + $0x20] ss:$0 sm:$0xff] }
  0xb2   : > { %v317_v16 = vpop.permute.xlu1 %316  ;;  %v357_v40 = vpop.permute.xlu0 %356 }
  0xb3   : > { %v320_v22 = vadd.f32 %v319_v14, %v317_v16  ;;  %v323_v23 = vadd.f32 %v322_v15, %v317_v16  ;;  %v360_v47 = vadd.f32 %v359_v38, %v357_v40  ;;  %v363_v48 = vadd.f32 %v362_v39, %v357_v40  ;;  %v412_v14 = vld [vmem:[%s1160_s4 + $0x28] ss:$0 sm:$0xff]  ;;  %v419_v16 = vld [vmem:[%s1160_s4 + $0x21] ss:$0 sm:$0xff]  ;;  %v452_v38 = vld [vmem:[%s1160_s4 + $0x2c] ss:$0 sm:$0xff] }
  0xb5   : > { %v321_v24 = vmin.f32 %v311_v20, %v320_v22  ;;  %v324_v25 = vmin.f32 %v314_v21, %v323_v23 }
  0xb7   : > { %v337_v30 = vpop.permute.xlu1 %336  ;;  %v331_v31 = vmin.f32 %v321_v24, %v330_v26  ;;  %v334_v32 = vmin.f32 %v324_v25, %v333_v27  ;;  %v387_v61 = vpop.permute.xlu0 %386  ;;  %v429_v27 = vld [vmem:[%s1160_s4 + $0x22] ss:$0 sm:$0xff] }
  0xb8   : > { %v340_v33 = vadd.f32 %v339_v28, %v337_v30  ;;  %v343_v34 = vadd.f32 %v342_v29, %v337_v30  ;;  %v390_v4 = vadd.f32 %v389_v59, %v387_v61  ;;  %v393_v5 = vadd.f32 %v392_v60, %v387_v61  ;;  %v432_v28 = vld [vmem:[%s1160_s4 + $0x2a] ss:$0 sm:$0xff]  ;;  %v472_v59 = vld [vmem:[%s1160_s4 + $0x2e] ss:$0 sm:$0xff] }
  0xba   : > { %v341_v41 = vmin.f32 %v331_v31, %v340_v33  ;;  %v344_v42 = vmin.f32 %v334_v32, %v343_v34  ;;  %v439_v34 = vld [vmem:[%s1160_s4 + $0x23] ss:$0 sm:$0xff] }
  0xbc   : > { %v347_v37 = vpop.permute.xlu1 %346  ;;  %v417_v18 = vpop.permute.xlu0 %416 }
  0xbd   : > { %v350_v43 = vadd.f32 %v349_v35, %v347_v37  ;;  %v353_v44 = vadd.f32 %v352_v36, %v347_v37  ;;  %v420_v25 = vadd.f32 %v419_v16, %v417_v18  ;;  %v423_v26 = vadd.f32 %v422_v17, %v417_v18  ;;  %v442_v35 = vld [vmem:[%s1160_s4 + $0x2b] ss:$0 sm:$0xff]  ;;  %v449_v37 = vld [vmem:[%s1160_s4 + $0x24] ss:$0 sm:$0xff] }
  0xbf   : > { %v351_v45 = vmin.f32 %v341_v41, %v350_v43  ;;  %v354_v46 = vmin.f32 %v344_v42, %v353_v44 }
  0xc1   : > { %v367_v51 = vpop.permute.xlu1 %366  ;;  %v361_v52 = vmin.f32 %v351_v45, %v360_v47  ;;  %v364_v53 = vmin.f32 %v354_v46, %v363_v48  ;;  %v447_v39 = vpop.permute.xlu0 %446  ;;  %v459_v48 = vld [vmem:[%s1160_s4 + $0x25] ss:$0 sm:$0xff] }
  0xc2   : > { %v370_v54 = vadd.f32 %v369_v49, %v367_v51  ;;  %v373_v55 = vadd.f32 %v372_v50, %v367_v51  ;;  %v450_v46 = vadd.f32 %v449_v37, %v447_v39  ;;  %v453_v47 = vadd.f32 %v452_v38, %v447_v39  ;;  %v462_v49 = vld [vmem:[%s1160_s4 + $0x2d] ss:$0 sm:$0xff] }
  0xc4   : > { %v371_v62 = vmin.f32 %v361_v52, %v370_v54  ;;  %v374_v63 = vmin.f32 %v364_v53, %v373_v55  ;;  %v479_v55 = vld [vmem:[%s1160_s4 + $0x27] ss:$0 sm:$0xff] }
  0xc6   : > { %v377_v58 = vpop.permute.xlu1 %376 }
  0xc7   : > { %v380_v0 = vadd.f32 %v379_v56, %v377_v58  ;;  %v383_v1 = vadd.f32 %v382_v57, %v377_v58  ;;  %v482_v56 = vld [vmem:[%s1160_s4 + $0x2f] ss:$0 sm:$0xff]  ;;  %v477_v57 = vpop.permute.xlu0 %476  ;;  %v469_v58 = vld [vmem:[%s1160_s4 + $0x26] ss:$0 sm:$0xff] }
  0xc8   : > { %v480_v61 = vadd.f32 %v479_v55, %v477_v57 }
  0xc9   : > { %v381_v2 = vmin.f32 %v371_v62, %v380_v0  ;;  %v384_v3 = vmin.f32 %v374_v63, %v383_v1  ;;  %v483_v62 = vadd.f32 %v482_v56, %v477_v57 }
  0xcb   : > { %v397_v8 = vpop.permute.xlu1 %396  ;;  %v391_v9 = vmin.f32 %v381_v2, %v390_v4  ;;  %v394_v10 = vmin.f32 %v384_v3, %v393_v5 }
  0xcc   : > { %v400_v11 = vadd.f32 %v399_v6, %v397_v8  ;;  %v403_v12 = vadd.f32 %v402_v7, %v397_v8 }
  0xce   : > { %v401_v19 = vmin.f32 %v391_v9, %v400_v11  ;;  %v404_v20 = vmin.f32 %v394_v10, %v403_v12 }
  0xd0   : > { %v407_v15 = vpop.permute.xlu1 %406 }
  0xd1   : > { %v410_v21 = vadd.f32 %v409_v13, %v407_v15  ;;  %v413_v22 = vadd.f32 %v412_v14, %v407_v15 }
  0xd3   : > { %v411_v23 = vmin.f32 %v401_v19, %v410_v21  ;;  %v414_v24 = vmin.f32 %v404_v20, %v413_v22 }
  0xd5   : > { %v427_v29 = vpop.permute.xlu1 %426  ;;  %v421_v30 = vmin.f32 %v411_v23, %v420_v25  ;;  %v424_v31 = vmin.f32 %v414_v24, %v423_v26 }
  0xd6   : > { %v430_v32 = vadd.f32 %v429_v27, %v427_v29  ;;  %v433_v33 = vadd.f32 %v432_v28, %v427_v29 }
  0xd8   : > { %v431_v40 = vmin.f32 %v421_v30, %v430_v32  ;;  %v434_v41 = vmin.f32 %v424_v31, %v433_v33 }
  0xda   : > { %v437_v36 = vpop.permute.xlu1 %436 }
  0xdb   : > { %v440_v42 = vadd.f32 %v439_v34, %v437_v36  ;;  %v443_v43 = vadd.f32 %v442_v35, %v437_v36 }
  0xdd   : > { %v441_v44 = vmin.f32 %v431_v40, %v440_v42  ;;  %v444_v45 = vmin.f32 %v434_v41, %v443_v43 }
  0xdf   : > { %v457_v50 = vpop.permute.xlu1 %456  ;;  %v451_v51 = vmin.f32 %v441_v44, %v450_v46  ;;  %v454_v52 = vmin.f32 %v444_v45, %v453_v47 }
  0xe0   : > { %v460_v53 = vadd.f32 %v459_v48, %v457_v50  ;;  %v463_v54 = vadd.f32 %v462_v49, %v457_v50 }
  0xe2   : > { %v461_v63 = vmin.f32 %v451_v51, %v460_v53  ;;  %v464_v0 = vmin.f32 %v454_v52, %v463_v54 }
  0xe4   : > { %v467_v60 = vpop.permute.xlu1 %466 }
  0xe5   : > { %v470_v1 = vadd.f32 %v469_v58, %v467_v60  ;;  %v473_v2 = vadd.f32 %v472_v59, %v467_v60 }
  0xe7   : > { %v471_v3 = vmin.f32 %v461_v63, %v470_v1  ;;  %v474_v4 = vmin.f32 %v464_v0, %v473_v2 }
  0xe9   : > { %v481_v5 = vmin.f32 %v471_v3, %v480_v61  ;;  %v484_v6 = vmin.f32 %v474_v4, %v483_v62 }
  0xeb   : > { %488 = vst [vmem:[%s1158_s3] sm:$0xff] %v481_v5  ;;  %489 = vst [vmem:[%s1158_s3 + $0x8] sm:$0xff] %v484_v6 }
  0xec PF: > { %p863_p11 = scmp.lt.s32.totalorder %s1035_s11, 1 }
  0xee   : > { %493 = sbr.rel (%p863_p11) target bundleno = 446 (0x1be), region = 59 }
  0xf3   : > { %v1246_v7 = vld [vmem:[%s1337_s0] sm:$0xff]  ;;  %v1069_v8 = vmov 2   ;;  %v1070_v9 = vmov 0   ;;  %v1071_v10 = vmov 3   ;;  %v1072_v11 = vmov 1  }
  0xf4   : > { %983 = vset.pattern.permute.xlu1 %v1069_v8  ;;  %981 = vset.pattern.permute.xlu0 %v1070_v9  ;;  %v1073_v12 = vmov 4   ;;  %v1074_v13 = vmov 5   ;;  %v1075_v14 = vmov 6   ;;  %v1076_v15 = vmov 8   ;;  %v500_v32 = vld [vmem:[%s1160_s4] ss:$0 sm:$0xff] }
  0xf5   : > { %517 = vperm.xlu1 %983, %v1246_v7   ;;  %497 = vperm.xlu0 %981, %v1246_v7   ;;  %v1077_v16 = vmov 7   ;;  %v1078_v17 = vmov 11   ;;  %v1079_v18 = vmov 9   ;;  %v1080_v19 = vmov 14   ;;  %v503_v33 = vld [vmem:[%s1160_s4 + $0x8] ss:$0 sm:$0xff] }
  0xf6   : > { %v1081_v20 = vmov 10   ;;  %v1082_v21 = vmov 17   ;;  %v1083_v22 = vmov 12   ;;  %v1084_v23 = vmov 20   ;;  %v510_v38 = vld [vmem:[%s1160_s4 + $0x1] ss:$0 sm:$0xff] }
  0xf7   : > { %v1085_v24 = vmov 13   ;;  %v1086_v25 = vmov 23   ;;  %v1087_v26 = vmov 15   ;;  %v1088_v27 = vmov 16   ;;  %v513_v39 = vld [vmem:[%s1160_s4 + $0x9] ss:$0 sm:$0xff] }
  0xf8   : > { %v1089_v28 = vmov 18   ;;  %v1090_v29 = vmov 19   ;;  %v1091_v30 = vmov 21   ;;  %v1092_v31 = vmov 22   ;;  %v520_v42 = vld [vmem:[%s1160_s4 + $0x2] ss:$0 sm:$0xff] }
  0xf9   : > { %984 = vset.pattern.permute.xlu1 %v1071_v10  ;;  %982 = vset.pattern.permute.xlu0 %v1072_v11  ;;  %v523_v43 = vld [vmem:[%s1160_s4 + $0xa] ss:$0 sm:$0xff]  ;;  %v530_v48 = vld [vmem:[%s1160_s4 + $0x3] ss:$0 sm:$0xff]  ;;  %v533_v49 = vld [vmem:[%s1160_s4 + $0xb] ss:$0 sm:$0xff] }
  0xfa   : > { %527 = vperm.xlu1 %984, %v1246_v7   ;;  %507 = vperm.xlu0 %982, %v1246_v7   ;;  %v540_v54 = vld [vmem:[%s1160_s4 + $0x4] ss:$0 sm:$0xff]  ;;  %v543_v55 = vld [vmem:[%s1160_s4 + $0xc] ss:$0 sm:$0xff]  ;;  %v550_v61 = vld [vmem:[%s1160_s4 + $0x5] ss:$0 sm:$0xff] }
  0xfb   : > { %v553_v62 = vld [vmem:[%s1160_s4 + $0xd] ss:$0 sm:$0xff]  ;;  %v560_v8 = vld [vmem:[%s1160_s4 + $0x6] ss:$0 sm:$0xff]  ;;  %v563_v9 = vld [vmem:[%s1160_s4 + $0xe] ss:$0 sm:$0xff] }
  0xfe   : > { %985 = vset.pattern.permute.xlu1 %v1073_v12  ;;  %986 = vset.pattern.permute.xlu0 %v1074_v13 }
  0xff   : > { %537 = vperm.xlu1 %985, %v1246_v7   ;;  %547 = vperm.xlu0 %986, %v1246_v7  }
 0x103   : > { %987 = vset.pattern.permute.xlu1 %v1075_v14  ;;  %989 = vset.pattern.permute.xlu0 %v1076_v15  ;;  %v570_v15 = vld [vmem:[%s1160_s4 + $0x7] ss:$0 sm:$0xff] }
 0x104   : > { %557 = vperm.xlu1 %987, %v1246_v7   ;;  %577 = vperm.xlu0 %989, %v1246_v7  }
 0x108   : > { %988 = vset.pattern.permute.xlu1 %v1077_v16  ;;  %992 = vset.pattern.permute.xlu0 %v1078_v17  ;;  %v573_v16 = vld [vmem:[%s1160_s4 + $0xf] ss:$0 sm:$0xff] }
 0x109   : > { %567 = vperm.xlu1 %988, %v1246_v7   ;;  %607 = vperm.xlu0 %992, %v1246_v7  }
 0x10d   : > { %990 = vset.pattern.permute.xlu1 %v1079_v18  ;;  %995 = vset.pattern.permute.xlu0 %v1080_v19  ;;  %v580_v18 = vld [vmem:[%s1160_s4 + $0x10] ss:$0 sm:$0xff]  ;;  %v583_v19 = vld [vmem:[%s1160_s4 + $0x18] ss:$0 sm:$0xff] }
 0x10e   : > { %587 = vperm.xlu1 %990, %v1246_v7   ;;  %637 = vperm.xlu0 %995, %v1246_v7  }
 0x112   : > { %991 = vset.pattern.permute.xlu1 %v1081_v20  ;;  %998 = vset.pattern.permute.xlu0 %v1082_v21 }
 0x113   : > { %597 = vperm.xlu1 %991, %v1246_v7   ;;  %667 = vperm.xlu0 %998, %v1246_v7  }
 0x117   : > { %993 = vset.pattern.permute.xlu1 %v1083_v22  ;;  %1001 = vset.pattern.permute.xlu0 %v1084_v23 }
 0x118   : > { %617 = vperm.xlu1 %993, %v1246_v7   ;;  %697 = vperm.xlu0 %1001, %v1246_v7  }
 0x11c   : > { %994 = vset.pattern.permute.xlu1 %v1085_v24  ;;  %1004 = vset.pattern.permute.xlu0 %v1086_v25 }
 0x11d   : > { %627 = vperm.xlu1 %994, %v1246_v7   ;;  %727 = vperm.xlu0 %1004, %v1246_v7  }
 0x121   : > { %996 = vset.pattern.permute.xlu1 %v1087_v26 }
 0x122   : > { %647 = vperm.xlu1 %996, %v1246_v7  }
 0x126   : > { %997 = vset.pattern.permute.xlu1 %v1088_v27 }
 0x127   : > { %657 = vperm.xlu1 %997, %v1246_v7  }
 0x12b   : > { %999 = vset.pattern.permute.xlu1 %v1089_v28 }
 0x12c   : > { %677 = vperm.xlu1 %999, %v1246_v7  }
 0x130   : > { %1000 = vset.pattern.permute.xlu1 %v1090_v29  ;;  %v590_v29 = vld [vmem:[%s1160_s4 + $0x11] ss:$0 sm:$0xff] }
 0x131   : > { %687 = vperm.xlu1 %1000, %v1246_v7  }
 0x135   : > { %1002 = vset.pattern.permute.xlu1 %v1091_v30  ;;  %v593_v30 = vld [vmem:[%s1160_s4 + $0x19] ss:$0 sm:$0xff] }
 0x136   : > { %707 = vperm.xlu1 %1002, %v1246_v7  }
 0x13a   : > { %1003 = vset.pattern.permute.xlu1 %v1092_v31 }
 0x13b   : > { %717 = vperm.xlu1 %1003, %v1246_v7  }
 0x170   : > { %v518_v34 = vpop.permute.xlu1 %517  ;;  %v498_v35 = vpop.permute.xlu0 %497 }
 0x171   : > { %v501_v36 = vadd.f32 %v500_v32, %v498_v35  ;;  %v504_v37 = vadd.f32 %v503_v33, %v498_v35  ;;  %v521_v50 = vadd.f32 %v520_v42, %v518_v34  ;;  %v524_v51 = vadd.f32 %v523_v43, %v518_v34 }
 0x173   : > { %v502_v40 = vmax.f32 %v501_v36, -1e+30  ;;  %v505_v41 = vmax.f32 %v504_v37, -1e+30  ;;  %v600_v36 = vld [vmem:[%s1160_s4 + $0x12] ss:$0 sm:$0xff] }
 0x174   : > { %v603_v37 = vld [vmem:[%s1160_s4 + $0x1a] ss:$0 sm:$0xff] }
 0x175   : > { %v528_v44 = vpop.permute.xlu1 %527  ;;  %v508_v45 = vpop.permute.xlu0 %507 }
 0x176   : > { %v511_v46 = vadd.f32 %v510_v38, %v508_v45  ;;  %v514_v47 = vadd.f32 %v513_v39, %v508_v45  ;;  %v531_v56 = vadd.f32 %v530_v48, %v528_v44  ;;  %v534_v57 = vadd.f32 %v533_v49, %v528_v44  ;;  %v610_v39 = vld [vmem:[%s1160_s4 + $0x13] ss:$0 sm:$0xff] }
 0x178   : > { %v512_v52 = vmax.f32 %v502_v40, %v511_v46  ;;  %v515_v53 = vmax.f32 %v505_v41, %v514_v47  ;;  %v613_v40 = vld [vmem:[%s1160_s4 + $0x1b] ss:$0 sm:$0xff] }
 0x17a   : > { %v522_v58 = vmax.f32 %v512_v52, %v521_v50  ;;  %v525_v59 = vmax.f32 %v515_v53, %v524_v51  ;;  %v538_v60 = vpop.permute.xlu1 %537  ;;  %v548_v63 = vpop.permute.xlu0 %547  ;;  %v620_v50 = vld [vmem:[%s1160_s4 + $0x14] ss:$0 sm:$0xff]  ;;  %v623_v51 = vld [vmem:[%s1160_s4 + $0x1c] ss:$0 sm:$0xff] }
 0x17b   : > { %v541_v0 = vadd.f32 %v540_v54, %v538_v60  ;;  %v544_v1 = vadd.f32 %v543_v55, %v538_v60  ;;  %v551_v4 = vadd.f32 %v550_v61, %v548_v63  ;;  %v554_v5 = vadd.f32 %v553_v62, %v548_v63  ;;  %v640_v60 = vld [vmem:[%s1160_s4 + $0x16] ss:$0 sm:$0xff]  ;;  %v643_v61 = vld [vmem:[%s1160_s4 + $0x1e] ss:$0 sm:$0xff] }
 0x17c   : > { %v532_v2 = vmax.f32 %v522_v58, %v531_v56  ;;  %v535_v3 = vmax.f32 %v525_v59, %v534_v57  ;;  %v630_v57 = vld [vmem:[%s1160_s4 + $0x15] ss:$0 sm:$0xff]  ;;  %v633_v58 = vld [vmem:[%s1160_s4 + $0x1d] ss:$0 sm:$0xff] }
 0x17e   : > { %v542_v6 = vmax.f32 %v532_v2, %v541_v0  ;;  %v545_v7 = vmax.f32 %v535_v3, %v544_v1 }
 0x17f   : > { %v558_v10 = vpop.permute.xlu1 %557  ;;  %v578_v20 = vpop.permute.xlu0 %577 }
 0x180   : > { %v552_v11 = vmax.f32 %v542_v6, %v551_v4  ;;  %v555_v12 = vmax.f32 %v545_v7, %v554_v5  ;;  %v561_v13 = vadd.f32 %v560_v8, %v558_v10  ;;  %v564_v14 = vadd.f32 %v563_v9, %v558_v10  ;;  %v650_v7 = vld [vmem:[%s1160_s4 + $0x17] ss:$0 sm:$0xff]  ;;  %v653_v8 = vld [vmem:[%s1160_s4 + $0x1f] ss:$0 sm:$0xff] }
 0x181   : > { %v581_v27 = vadd.f32 %v580_v18, %v578_v20  ;;  %v584_v28 = vadd.f32 %v583_v19, %v578_v20  ;;  %v673_v18 = vld [vmem:[%s1160_s4 + $0x29] ss:$0 sm:$0xff] }
 0x182   : > { %v562_v21 = vmax.f32 %v552_v11, %v561_v13  ;;  %v565_v22 = vmax.f32 %v555_v12, %v564_v14  ;;  %v660_v14 = vld [vmem:[%s1160_s4 + $0x20] ss:$0 sm:$0xff] }
 0x184   : > { %v568_v17 = vpop.permute.xlu1 %567  ;;  %v608_v41 = vpop.permute.xlu0 %607 }
 0x185   : > { %v571_v23 = vadd.f32 %v570_v15, %v568_v17  ;;  %v574_v24 = vadd.f32 %v573_v16, %v568_v17  ;;  %v611_v48 = vadd.f32 %v610_v39, %v608_v41  ;;  %v614_v49 = vadd.f32 %v613_v40, %v608_v41  ;;  %v663_v15 = vld [vmem:[%s1160_s4 + $0x28] ss:$0 sm:$0xff]  ;;  %v670_v17 = vld [vmem:[%s1160_s4 + $0x21] ss:$0 sm:$0xff]  ;;  %v703_v39 = vld [vmem:[%s1160_s4 + $0x2c] ss:$0 sm:$0xff] }
 0x187   : > { %v572_v25 = vmax.f32 %v562_v21, %v571_v23  ;;  %v575_v26 = vmax.f32 %v565_v22, %v574_v24 }
 0x189   : > { %v588_v31 = vpop.permute.xlu1 %587  ;;  %v582_v32 = vmax.f32 %v572_v25, %v581_v27  ;;  %v585_v33 = vmax.f32 %v575_v26, %v584_v28  ;;  %v638_v62 = vpop.permute.xlu0 %637  ;;  %v680_v28 = vld [vmem:[%s1160_s4 + $0x22] ss:$0 sm:$0xff] }
 0x18a   : > { %v591_v34 = vadd.f32 %v590_v29, %v588_v31  ;;  %v594_v35 = vadd.f32 %v593_v30, %v588_v31  ;;  %v641_v5 = vadd.f32 %v640_v60, %v638_v62  ;;  %v644_v6 = vadd.f32 %v643_v61, %v638_v62  ;;  %v683_v29 = vld [vmem:[%s1160_s4 + $0x2a] ss:$0 sm:$0xff]  ;;  %v723_v60 = vld [vmem:[%s1160_s4 + $0x2e] ss:$0 sm:$0xff] }
 0x18c   : > { %v592_v42 = vmax.f32 %v582_v32, %v591_v34  ;;  %v595_v43 = vmax.f32 %v585_v33, %v594_v35  ;;  %v690_v35 = vld [vmem:[%s1160_s4 + $0x23] ss:$0 sm:$0xff] }
 0x18e   : > { %v598_v38 = vpop.permute.xlu1 %597  ;;  %v668_v19 = vpop.permute.xlu0 %667 }
 0x18f   : > { %v601_v44 = vadd.f32 %v600_v36, %v598_v38  ;;  %v604_v45 = vadd.f32 %v603_v37, %v598_v38  ;;  %v671_v26 = vadd.f32 %v670_v17, %v668_v19  ;;  %v674_v27 = vadd.f32 %v673_v18, %v668_v19  ;;  %v693_v36 = vld [vmem:[%s1160_s4 + $0x2b] ss:$0 sm:$0xff]  ;;  %v700_v38 = vld [vmem:[%s1160_s4 + $0x24] ss:$0 sm:$0xff] }
 0x191   : > { %v602_v46 = vmax.f32 %v592_v42, %v601_v44  ;;  %v605_v47 = vmax.f32 %v595_v43, %v604_v45 }
 0x193   : > { %v618_v52 = vpop.permute.xlu1 %617  ;;  %v612_v53 = vmax.f32 %v602_v46, %v611_v48  ;;  %v615_v54 = vmax.f32 %v605_v47, %v614_v49  ;;  %v698_v40 = vpop.permute.xlu0 %697  ;;  %v710_v49 = vld [vmem:[%s1160_s4 + $0x25] ss:$0 sm:$0xff] }
 0x194   : > { %v621_v55 = vadd.f32 %v620_v50, %v618_v52  ;;  %v624_v56 = vadd.f32 %v623_v51, %v618_v52  ;;  %v701_v47 = vadd.f32 %v700_v38, %v698_v40  ;;  %v704_v48 = vadd.f32 %v703_v39, %v698_v40  ;;  %v713_v50 = vld [vmem:[%s1160_s4 + $0x2d] ss:$0 sm:$0xff] }
 0x196   : > { %v622_v63 = vmax.f32 %v612_v53, %v621_v55  ;;  %v625_v0 = vmax.f32 %v615_v54, %v624_v56  ;;  %v730_v56 = vld [vmem:[%s1160_s4 + $0x27] ss:$0 sm:$0xff] }
 0x198   : > { %v628_v59 = vpop.permute.xlu1 %627 }
 0x199   : > { %v631_v1 = vadd.f32 %v630_v57, %v628_v59  ;;  %v634_v2 = vadd.f32 %v633_v58, %v628_v59  ;;  %v733_v57 = vld [vmem:[%s1160_s4 + $0x2f] ss:$0 sm:$0xff]  ;;  %v728_v58 = vpop.permute.xlu0 %727  ;;  %v720_v59 = vld [vmem:[%s1160_s4 + $0x26] ss:$0 sm:$0xff] }
 0x19a   : > { %v731_v62 = vadd.f32 %v730_v56, %v728_v58 }
 0x19b   : > { %v632_v3 = vmax.f32 %v622_v63, %v631_v1  ;;  %v635_v4 = vmax.f32 %v625_v0, %v634_v2  ;;  %v734_v63 = vadd.f32 %v733_v57, %v728_v58 }
 0x19d   : > { %v648_v9 = vpop.permute.xlu1 %647  ;;  %v642_v10 = vmax.f32 %v632_v3, %v641_v5  ;;  %v645_v11 = vmax.f32 %v635_v4, %v644_v6 }
 0x19e   : > { %v651_v12 = vadd.f32 %v650_v7, %v648_v9  ;;  %v654_v13 = vadd.f32 %v653_v8, %v648_v9 }
 0x1a0   : > { %v652_v20 = vmax.f32 %v642_v10, %v651_v12  ;;  %v655_v21 = vmax.f32 %v645_v11, %v654_v13 }
 0x1a2   : > { %v658_v16 = vpop.permute.xlu1 %657 }
 0x1a3   : > { %v661_v22 = vadd.f32 %v660_v14, %v658_v16  ;;  %v664_v23 = vadd.f32 %v663_v15, %v658_v16 }
 0x1a5   : > { %v662_v24 = vmax.f32 %v652_v20, %v661_v22  ;;  %v665_v25 = vmax.f32 %v655_v21, %v664_v23 }
 0x1a7   : > { %v678_v30 = vpop.permute.xlu1 %677  ;;  %v672_v31 = vmax.f32 %v662_v24, %v671_v26  ;;  %v675_v32 = vmax.f32 %v665_v25, %v674_v27 }
 0x1a8   : > { %v681_v33 = vadd.f32 %v680_v28, %v678_v30  ;;  %v684_v34 = vadd.f32 %v683_v29, %v678_v30 }
 0x1aa   : > { %v682_v41 = vmax.f32 %v672_v31, %v681_v33  ;;  %v685_v42 = vmax.f32 %v675_v32, %v684_v34 }
 0x1ac   : > { %v688_v37 = vpop.permute.xlu1 %687 }
 0x1ad   : > { %v691_v43 = vadd.f32 %v690_v35, %v688_v37  ;;  %v694_v44 = vadd.f32 %v693_v36, %v688_v37 }
 0x1af   : > { %v692_v45 = vmax.f32 %v682_v41, %v691_v43  ;;  %v695_v46 = vmax.f32 %v685_v42, %v694_v44 }
 0x1b1   : > { %v708_v51 = vpop.permute.xlu1 %707  ;;  %v702_v52 = vmax.f32 %v692_v45, %v701_v47  ;;  %v705_v53 = vmax.f32 %v695_v46, %v704_v48 }
 0x1b2   : > { %v711_v54 = vadd.f32 %v710_v49, %v708_v51  ;;  %v714_v55 = vadd.f32 %v713_v50, %v708_v51 }
 0x1b4   : > { %v712_v0 = vmax.f32 %v702_v52, %v711_v54  ;;  %v715_v1 = vmax.f32 %v705_v53, %v714_v55 }
 0x1b6   : > { %v718_v61 = vpop.permute.xlu1 %717 }
 0x1b7   : > { %v721_v2 = vadd.f32 %v720_v59, %v718_v61  ;;  %v724_v3 = vadd.f32 %v723_v60, %v718_v61 }
 0x1b9   : > { %v722_v4 = vmax.f32 %v712_v0, %v721_v2  ;;  %v725_v5 = vmax.f32 %v715_v1, %v724_v3 }
 0x1bb   : > { %v732_v6 = vmax.f32 %v722_v4, %v731_v62  ;;  %v735_v7 = vmax.f32 %v725_v5, %v734_v63 }
 0x1bd   : > { %739 = vst [vmem:[%s1158_s3] sm:$0xff] %v732_v6  ;;  %740 = vst [vmem:[%s1158_s3 + $0x8] sm:$0xff] %v735_v7 }
 0x1be PF: > { %s12_s13 = sadd.s32 1, %s1043_s13   ;;  %s1340_s9 = smov %s1031_s10 }
 0x1bf   : > { %p9_p12 = scmp.ge.s32.totalorder %s12_s13, 4   ;;  %s1341_s10 = smov %s1143_s17 }
 0x1c0   : > { %s1342_s11 = smov %s1039_s12  ;;  %s1343_s12 = smov %s1345_s14 }
 0x1c1   :  { %11 = sbr.rel (!%p9_p12) target bundleno = 3 (0x3), region = 99 }

</bundles_post_ra>
